<compile_context>
chip_gen: v6e
topology: v6e:2x2x1
jax: 0.10.0
libtpu: 0.0.40
codegen_flags: <defaults>
</compile_context>

<pallas_src>
import functools
import math

import jax
import jax.numpy as jnp
from jax import lax
from jax.experimental import pallas as pl
from jax.experimental.pallas import tpu as pltpu

K = 7          # conv kernel size
PAD = 3        # conv padding
_LANE = 128
_SUBLANE = 8


def _round_up(x, m):
    return ((x + m - 1) // m) * m


def _pick_strip(img_h, wp):
    """Largest row-strip s.t. the K partial accumulators stay ~<= 16 vregs."""
    budget = 16 * 4096
    max_rows = max(_SUBLANE, budget // (K * wp * 4))
    if img_h <= max_rows:
        return img_h
    for cand in range(max_rows, 0, -1):
        if img_h % cand == 0:
            return cand
    return 1


def _pick_cb(c, hw, img_h, img_w, hp, wp):
    """Channel-block size from the lane/sublane-PADDED VMEM footprint."""
    def footprint(cb, multi):
        in_blk = _round_up(cb, _SUBLANE) * _round_up(hw, _LANE) * 4
        out_blk = _round_up(img_h, _SUBLANE) * _round_up(img_w, _LANE) * 4
        pad_blk = _round_up(2 * hp, _SUBLANE) * wp * 4
        acc_blk = 2 * _SUBLANE * _round_up(hw, _LANE) * 4 if multi else 0
        # 2x: in/out blocks are double-buffered by the BlockSpec pipeline.
        return 2 * (in_blk + out_blk) + pad_blk + acc_blk

    limit = 40 * 1024 * 1024     # keeps a double-buffered pipeline inside v7x's 64 MiB
    if footprint(c, False) <= limit:
        return c, footprint(c, False)          # collapsed channel axis (common case)
    cands = [d for d in range(c - 1, 0, -1) if c % d == 0 and d % _SUBLANE == 0]
    for cb in cands:
        fp = footprint(cb, True)
        if fp <= limit:
            return cb, fp
    cb = cands[-1] if cands else 1
    return cb, footprint(cb, True)


def _sa_kernel(x_ref, w_ref, o_ref, pad_ref, *acc_refs,
               img_h, img_w, c_total, n_cb, strip):
    # x_ref   : VMEM (CB, H*W)   -- lane-dense channel block of one batch element
    # w_ref   : SMEM (2*K*K,)    -- conv1.weight flattened (ci, dh, dw) order
    # o_ref   : VMEM (1, H, W)   -- attention map (resident across channel axis)
    # pad_ref : VMEM (2*(H+2*PAD), Wp) f32 -- zero-padded 2-plane conv input,
    #           lane dim Wp rounded up to a multiple of 128.
    # acc_refs: (sum_ref, max_ref) of shape (1, H*W) f32, only when n_cb > 1.
    CB, _ = x_ref.shape
    Hp = img_h + 2 * PAD
    Wp = pad_ref.shape[-1]
    multi = n_cb > 1
    unroll = True if CB <= 32 else 8

    # ---- channel mean/max reduction on full-width (1, H*W) rows ----
    def _acc_body(i, carry):
        s, m = carry
        row = x_ref[pl.ds(i, 1), :].astype(jnp.float32)     # (1, H*W)
        return s + row, jnp.maximum(m, row)

    if multi:
        cb = pl.program_id(1)

        @pl.when(cb == 0)
        def _init():
            # Scratch halo must be zero; the interior is fully overwritten at
            # finalize.  Zeroing per batch step (not once per grid) keeps the
            # kernel correct when the batch axis is sharded across TensorCores
            # (per-core scratch); cost is ~6 full-width vector stores.
            pad_ref[...] = jnp.zeros_like(pad_ref)
            acc_refs[0][...] = jnp.zeros_like(acc_refs[0])
            acc_refs[1][...] = jnp.full_like(acc_refs[1], -jnp.inf)

        s, m = lax.fori_loop(0, CB, _acc_body,
                             (acc_refs[0][...], acc_refs[1][...]),
                             unroll=unroll)
        acc_refs[0][...] = s
        acc_refs[1][...] = m
    else:
        pad_ref[...] = jnp.zeros_like(pad_ref)
        row0 = x_ref[pl.ds(0, 1), :].astype(jnp.float32)
        s, m = lax.fori_loop(1, CB, _acc_body, (row0, row0), unroll=unroll)

    def _finalize():
        avg = s * jnp.float32(1.0 / c_total)    # torch.mean over C, (1, H*W)
        mx = m                                  # torch.max  over C, (1, H*W)

        # Scatter the two planes into the interior of the padded conv scratch
        # (borders stay zero).  Static lane slices of the flat rows; interior
        # sits at lane offset PAD so the conv epilogue only needs forward
        # (non-negative) lane slices.
        for r in range(img_h):
            sl = slice(r * img_w, (r + 1) * img_w)
            pad_ref[PAD + r:PAD + r + 1, PAD:PAD + img_w] = avg[:, sl]
            pad_ref[Hp + PAD + r:Hp + PAD + r + 1, PAD:PAD + img_w] = mx[:, sl]

        # 7x7 conv, stride 1, pad 3, no bias — tiled over row strips.  Fully
        # unrolled static loops: SMEM weight reads and slab row starts are
        # immediates; 2*K lane-aligned slab loads and K*2*K full-width VPU
        # multiply-adds per strip, K lane-offset slices in the epilogue.
        for r0 in range(0, img_h, strip):
            partials = [jnp.zeros((strip, Wp), jnp.float32) for _ in range(K)]
            for ci in range(2):
                for dh in range(K):
                    base = ci * Hp + r0 + dh
                    slab = pad_ref[base:base + strip, :]        # (strip, Wp)
                    for dw in range(K):
                        wgt = w_ref[(ci * K + dh) * K + dw]
                        partials[dw] = partials[dw] + wgt * slab
            acc = partials[0][:, 0:img_w]
            for dw in range(1, K):
                acc = acc + partials[dw][:, dw:dw + img_w]
            o_ref[0, r0:r0 + strip, :] = jax.nn.sigmoid(acc).astype(o_ref.dtype)

    if multi:
        pl.when(pl.program_id(1) == n_cb - 1)(_finalize)
    else:
        _finalize()


def spatial_attention(x, w_flat):
    """SpatialAttention.forward: x (B, C, H, W) f32, w_flat (2*7*7,) f32
    -> sigmoid(conv7x7(concat([mean_C(x), max_C(x)]))) of shape (B, 1, H, W)."""
    B, C, H, W = x.shape
    HW = H * W
    Hp = H + 2 * PAD
    Wp = _round_up(W + 2 * PAD, _LANE)

    CB, footprint = _pick_cb(C, HW, H, W, Hp, Wp)
    n_cb = C // CB
    strip = _pick_strip(H, Wp)

    kernel = functools.partial(_sa_kernel, img_h=H, img_w=W, c_total=C,
                               n_cb=n_cb, strip=strip)

    scratch = [pltpu.VMEM((2 * Hp, Wp), jnp.float32)]      # padded conv planes
    if n_cb > 1:
        scratch += [pltpu.VMEM((1, HW), jnp.float32),       # running channel sum
                    pltpu.VMEM((1, HW), jnp.float32)]        # running channel max

    if n_cb == 1:
        grid = (B,)
        x_map = lambda b: (b, 0, 0)
        o_map = lambda b: (b, 0, 0, 0)
        dims = ("parallel",)
    else:
        grid = (B, n_cb)
        x_map = lambda b, c: (b, c, 0)
        o_map = lambda b, c: (b, 0, 0, 0)
        dims = ("parallel", "arbitrary")

    # Padded footprint + headroom; floored at the default scoped limit so we
    # never hand the compiler less room than it gets by default.
    vmem_limit = min(max(footprint + (2 << 20), 32 << 20), 120 << 20)

    x_flat = x.reshape(B, C, HW)   # free bitcast; lane-dense blocks + contiguous DMA

    return pl.pallas_call(
        kernel,
        out_shape=jax.ShapeDtypeStruct((B, 1, H, W), x.dtype),
        grid=grid,
        in_specs=[
            pl.BlockSpec((None, CB, HW), x_map),
            pl.BlockSpec(memory_space=pltpu.MemorySpace.SMEM),
        ],
        out_specs=pl.BlockSpec((None, 1, H, W), o_map),
        scratch_shapes=scratch,
        compiler_params=pltpu.CompilerParams(
            dimension_semantics=dims,
            vmem_limit_bytes=int(vmem_limit),
        ),
    )(x_flat, w_flat)


def _reference(x, w):
    # Pure-JAX reference reproducing the PyTorch SpatialAttention forward.
    avg = jnp.mean(x, axis=1, keepdims=True)
    mx = jnp.max(x, axis=1, keepdims=True)
    xc = jnp.concatenate([avg, mx], axis=1)
    out = jax.lax.conv_general_dilated(
        xc, w, window_strides=(1, 1), padding=((PAD, PAD), (PAD, PAD)),
        dimension_numbers=("NCHW", "OIHW", "NCHW"))
    return jax.nn.sigmoid(out)


if __name__ == "__main__":
    key = jax.random.PRNGKey(0)
    kx, kw = jax.random.split(key)

    # split_len1 = in_1 * 4 = 12 channels (Haar split in Hinet_att); small spatial.
    B, C, H, W = 2, 12, 16, 16
    x = jax.random.normal(kx, (B, C, H, W), dtype=jnp.float32)

    # Deterministic conv1.weight init (PyTorch default: U(-1/sqrt(fan_in), +)).
    fan_in = 2 * K * K
    bound = 1.0 / math.sqrt(fan_in)
    w = jax.random.uniform(kw, (1, 2, K, K), dtype=jnp.float32,
                           minval=-bound, maxval=bound)

    out = spatial_attention(x, w.reshape(-1))
    out = jax.block_until_ready(out)

    ref = _reference(x, w)
    assert out.shape == (B, 1, H, W)
    assert jnp.allclose(out, ref, atol=1e-5, rtol=1e-5), "mismatch vs reference"

    print("KERNEL_OK")
</pallas_src>

<mosaic_0001>
module attributes {stable_mosaic.version = 11 : i64} {
  func.func @_sa_kernel(%arg0: i32, %arg1: memref<1x12x256xf32, #tpu.memory_space<vmem>>, %arg2: memref<98xf32, #tpu.memory_space<smem>>, %arg3: memref<1x1x16x16xf32, #tpu.memory_space<vmem>>, %arg4: memref<44x128xf32, #tpu.memory_space<vmem>>) attributes {dimension_semantics = [#tpu.dimension_semantics<parallel>], iteration_bounds = array<i64: 2>, scalar_prefetch = 0 : i64, scratch_operands = 1 : i64, tpu.core_type = #tpu.core_type<tc>, window_params = [{transform_indices = @transform_0, window_bounds = array<i64: 1, 12, 256>}, {transform_indices = @transform_1, window_bounds = array<i64: 98>}, {transform_indices = @transform_2, window_bounds = array<i64: 1, 1, 16, 16>}]} {
    %cst = arith.constant 0.000000e+00 : f32
    %0 = vector.broadcast %cst : f32 to vector<44x128xf32>
    %c0 = arith.constant 0 : index
    %c0_0 = arith.constant 0 : index
    %1 = vector.load %arg4[%c0, %c0_0] : memref<44x128xf32, #tpu.memory_space<vmem>>, vector<44x128xf32>
    tpu.vector_store %arg4[%c0, %c0_0], %0 {strides = array<i32>} : memref<44x128xf32, #tpu.memory_space<vmem>>, vector<44x128xf32>,
    %c0_1 = arith.constant 0 : index
    %c0_2 = arith.constant 0 : index
    %c0_3 = arith.constant 0 : index
    %2 = vector.load %arg1[%c0_1, %c0_2, %c0_3] : memref<1x12x256xf32, #tpu.memory_space<vmem>>, vector<1x1x256xf32>
    %3 = vector.shape_cast %2 : vector<1x1x256xf32> to vector<1x256xf32>
    %c1_i32 = arith.constant 1 : i32
    %c0_4 = arith.constant 0 : index
    %4 = arith.index_cast %c1_i32 : i32 to index
    %c0_5 = arith.constant 0 : index
    %5 = vector.load %arg1[%c0_4, %4, %c0_5] : memref<1x12x256xf32, #tpu.memory_space<vmem>>, vector<1x1x256xf32>
    %6 = vector.shape_cast %5 : vector<1x1x256xf32> to vector<1x256xf32>
    %7 = arith.addf %3, %6 : vector<1x256xf32>
    %8 = arith.maximumf %3, %6 : vector<1x256xf32>
    %c2_i32 = arith.constant 2 : i32
    %c0_6 = arith.constant 0 : index
    %9 = arith.index_cast %c2_i32 : i32 to index
    %c0_7 = arith.constant 0 : index
    %10 = vector.load %arg1[%c0_6, %9, %c0_7] : memref<1x12x256xf32, #tpu.memory_space<vmem>>, vector<1x1x256xf32>
    %11 = vector.shape_cast %10 : vector<1x1x256xf32> to vector<1x256xf32>
    %12 = arith.addf %7, %11 : vector<1x256xf32>
    %13 = arith.maximumf %8, %11 : vector<1x256xf32>
    %c3_i32 = arith.constant 3 : i32
    %c0_8 = arith.constant 0 : index
    %14 = arith.index_cast %c3_i32 : i32 to index
    %c0_9 = arith.constant 0 : index
    %15 = vector.load %arg1[%c0_8, %14, %c0_9] : memref<1x12x256xf32, #tpu.memory_space<vmem>>, vector<1x1x256xf32>
    %16 = vector.shape_cast %15 : vector<1x1x256xf32> to vector<1x256xf32>
    %17 = arith.addf %12, %16 : vector<1x256xf32>
    %18 = arith.maximumf %13, %16 : vector<1x256xf32>
    %c4_i32 = arith.constant 4 : i32
    %c0_10 = arith.constant 0 : index
    %19 = arith.index_cast %c4_i32 : i32 to index
    %c0_11 = arith.constant 0 : index
    %20 = vector.load %arg1[%c0_10, %19, %c0_11] : memref<1x12x256xf32, #tpu.memory_space<vmem>>, vector<1x1x256xf32>
    %21 = vector.shape_cast %20 : vector<1x1x256xf32> to vector<1x256xf32>
    %22 = arith.addf %17, %21 : vector<1x256xf32>
    %23 = arith.maximumf %18, %21 : vector<1x256xf32>
    %c5_i32 = arith.constant 5 : i32
    %c0_12 = arith.constant 0 : index
    %24 = arith.index_cast %c5_i32 : i32 to index
    %c0_13 = arith.constant 0 : index
    %25 = vector.load %arg1[%c0_12, %24, %c0_13] : memref<1x12x256xf32, #tpu.memory_space<vmem>>, vector<1x1x256xf32>
    %26 = vector.shape_cast %25 : vector<1x1x256xf32> to vector<1x256xf32>
    %27 = arith.addf %22, %26 : vector<1x256xf32>
    %28 = arith.maximumf %23, %26 : vector<1x256xf32>
    %c6_i32 = arith.constant 6 : i32
    %c0_14 = arith.constant 0 : index
    %29 = arith.index_cast %c6_i32 : i32 to index
    %c0_15 = arith.constant 0 : index
    %30 = vector.load %arg1[%c0_14, %29, %c0_15] : memref<1x12x256xf32, #tpu.memory_space<vmem>>, vector<1x1x256xf32>
    %31 = vector.shape_cast %30 : vector<1x1x256xf32> to vector<1x256xf32>
    %32 = arith.addf %27, %31 : vector<1x256xf32>
    %33 = arith.maximumf %28, %31 : vector<1x256xf32>
    %c7_i32 = arith.constant 7 : i32
    %c0_16 = arith.constant 0 : index
    %34 = arith.index_cast %c7_i32 : i32 to index
    %c0_17 = arith.constant 0 : index
    %35 = vector.load %arg1[%c0_16, %34, %c0_17] : memref<1x12x256xf32, #tpu.memory_space<vmem>>, vector<1x1x256xf32>
    %36 = vector.shape_cast %35 : vector<1x1x256xf32> to vector<1x256xf32>
    %37 = arith.addf %32, %36 : vector<1x256xf32>
    %38 = arith.maximumf %33, %36 : vector<1x256xf32>
    %c8_i32 = arith.constant 8 : i32
    %c0_18 = arith.constant 0 : index
    %39 = arith.index_cast %c8_i32 : i32 to index
    %c0_19 = arith.constant 0 : index
    %40 = vector.load %arg1[%c0_18, %39, %c0_19] : memref<1x12x256xf32, #tpu.memory_space<vmem>>, vector<1x1x256xf32>
    %41 = vector.shape_cast %40 : vector<1x1x256xf32> to vector<1x256xf32>
    %42 = arith.addf %37, %41 : vector<1x256xf32>
    %43 = arith.maximumf %38, %41 : vector<1x256xf32>
    %c9_i32 = arith.constant 9 : i32
    %c0_20 = arith.constant 0 : index
    %44 = arith.index_cast %c9_i32 : i32 to index
    %c0_21 = arith.constant 0 : index
    %45 = vector.load %arg1[%c0_20, %44, %c0_21] : memref<1x12x256xf32, #tpu.memory_space<vmem>>, vector<1x1x256xf32>
    %46 = vector.shape_cast %45 : vector<1x1x256xf32> to vector<1x256xf32>
    %47 = arith.addf %42, %46 : vector<1x256xf32>
    %48 = arith.maximumf %43, %46 : vector<1x256xf32>
    %c10_i32 = arith.constant 10 : i32
    %c0_22 = arith.constant 0 : index
    %49 = arith.index_cast %c10_i32 : i32 to index
    %c0_23 = arith.constant 0 : index
    %50 = vector.load %arg1[%c0_22, %49, %c0_23] : memref<1x12x256xf32, #tpu.memory_space<vmem>>, vector<1x1x256xf32>
    %51 = vector.shape_cast %50 : vector<1x1x256xf32> to vector<1x256xf32>
    %52 = arith.addf %47, %51 : vector<1x256xf32>
    %53 = arith.maximumf %48, %51 : vector<1x256xf32>
    %c11_i32 = arith.constant 11 : i32
    %c0_24 = arith.constant 0 : index
    %54 = arith.index_cast %c11_i32 : i32 to index
    %c0_25 = arith.constant 0 : index
    %55 = vector.load %arg1[%c0_24, %54, %c0_25] : memref<1x12x256xf32, #tpu.memory_space<vmem>>, vector<1x1x256xf32>
    %56 = vector.shape_cast %55 : vector<1x1x256xf32> to vector<1x256xf32>
    %57 = arith.addf %52, %56 : vector<1x256xf32>
    %58 = arith.maximumf %53, %56 : vector<1x256xf32>
    %c11_i32_26 = arith.constant 11 : i32
    %cst_27 = arith.constant 0.0833333358 : f32
    %59 = vector.broadcast %cst_27 : f32 to vector<1x256xf32>
    %60 = arith.mulf %57, %59 : vector<1x256xf32>
    %61 = vector.extract_strided_slice %60 {offsets = [0, 0], sizes = [1, 16], strides = [1, 1]} : vector<1x256xf32> to vector<1x16xf32>
    %c3 = arith.constant 3 : index
    %c3_28 = arith.constant 3 : index
    %62 = vector.load %arg4[%c3, %c3_28] : memref<44x128xf32, #tpu.memory_space<vmem>>, vector<1x16xf32>
    tpu.vector_store %arg4[%c3, %c3_28], %61 {strides = array<i32>} : memref<44x128xf32, #tpu.memory_space<vmem>>, vector<1x16xf32>,
    %63 = vector.extract_strided_slice %58 {offsets = [0, 0], sizes = [1, 16], strides = [1, 1]} : vector<1x256xf32> to vector<1x16xf32>
    %c25 = arith.constant 25 : index
    %c3_29 = arith.constant 3 : index
    %64 = vector.load %arg4[%c25, %c3_29] : memref<44x128xf32, #tpu.memory_space<vmem>>, vector<1x16xf32>
    tpu.vector_store %arg4[%c25, %c3_29], %63 {strides = array<i32>} : memref<44x128xf32, #tpu.memory_space<vmem>>, vector<1x16xf32>,
    %65 = vector.extract_strided_slice %60 {offsets = [0, 16], sizes = [1, 16], strides = [1, 1]} : vector<1x256xf32> to vector<1x16xf32>
    %c4 = arith.constant 4 : index
    %c3_30 = arith.constant 3 : index
    %66 = vector.load %arg4[%c4, %c3_30] : memref<44x128xf32, #tpu.memory_space<vmem>>, vector<1x16xf32>
    tpu.vector_store %arg4[%c4, %c3_30], %65 {strides = array<i32>} : memref<44x128xf32, #tpu.memory_space<vmem>>, vector<1x16xf32>,
    %67 = vector.extract_strided_slice %58 {offsets = [0, 16], sizes = [1, 16], strides = [1, 1]} : vector<1x256xf32> to vector<1x16xf32>
    %c26 = arith.constant 26 : index
    %c3_31 = arith.constant 3 : index
    %68 = vector.load %arg4[%c26, %c3_31] : memref<44x128xf32, #tpu.memory_space<vmem>>, vector<1x16xf32>
    tpu.vector_store %arg4[%c26, %c3_31], %67 {strides = array<i32>} : memref<44x128xf32, #tpu.memory_space<vmem>>, vector<1x16xf32>,
    %69 = vector.extract_strided_slice %60 {offsets = [0, 32], sizes = [1, 16], strides = [1, 1]} : vector<1x256xf32> to vector<1x16xf32>
    %c5 = arith.constant 5 : index
    %c3_32 = arith.constant 3 : index
    %70 = vector.load %arg4[%c5, %c3_32] : memref<44x128xf32, #tpu.memory_space<vmem>>, vector<1x16xf32>
    tpu.vector_store %arg4[%c5, %c3_32], %69 {strides = array<i32>} : memref<44x128xf32, #tpu.memory_space<vmem>>, vector<1x16xf32>,
    %71 = vector.extract_strided_slice %58 {offsets = [0, 32], sizes = [1, 16], strides = [1, 1]} : vector<1x256xf32> to vector<1x16xf32>
    %c27 = arith.constant 27 : index
    %c3_33 = arith.constant 3 : index
    %72 = vector.load %arg4[%c27, %c3_33] : memref<44x128xf32, #tpu.memory_space<vmem>>, vector<1x16xf32>
    tpu.vector_store %arg4[%c27, %c3_33], %71 {strides = array<i32>} : memref<44x128xf32, #tpu.memory_space<vmem>>, vector<1x16xf32>,
    %73 = vector.extract_strided_slice %60 {offsets = [0, 48], sizes = [1, 16], strides = [1, 1]} : vector<1x256xf32> to vector<1x16xf32>
    %c6 = arith.constant 6 : index
    %c3_34 = arith.constant 3 : index
    %74 = vector.load %arg4[%c6, %c3_34] : memref<44x128xf32, #tpu.memory_space<vmem>>, vector<1x16xf32>
    tpu.vector_store %arg4[%c6, %c3_34], %73 {strides = array<i32>} : memref<44x128xf32, #tpu.memory_space<vmem>>, vector<1x16xf32>,
    %75 = vector.extract_strided_slice %58 {offsets = [0, 48], sizes = [1, 16], strides = [1, 1]} : vector<1x256xf32> to vector<1x16xf32>
    %c28 = arith.constant 28 : index
    %c3_35 = arith.constant 3 : index
    %76 = vector.load %arg4[%c28, %c3_35] : memref<44x128xf32, #tpu.memory_space<vmem>>, vector<1x16xf32>
    tpu.vector_store %arg4[%c28, %c3_35], %75 {strides = array<i32>} : memref<44x128xf32, #tpu.memory_space<vmem>>, vector<1x16xf32>,
    %77 = vector.extract_strided_slice %60 {offsets = [0, 64], sizes = [1, 16], strides = [1, 1]} : vector<1x256xf32> to vector<1x16xf32>
    %c7 = arith.constant 7 : index
    %c3_36 = arith.constant 3 : index
    %78 = vector.load %arg4[%c7, %c3_36] : memref<44x128xf32, #tpu.memory_space<vmem>>, vector<1x16xf32>
    tpu.vector_store %arg4[%c7, %c3_36], %77 {strides = array<i32>} : memref<44x128xf32, #tpu.memory_space<vmem>>, vector<1x16xf32>,
    %79 = vector.extract_strided_slice %58 {offsets = [0, 64], sizes = [1, 16], strides = [1, 1]} : vector<1x256xf32> to vector<1x16xf32>
    %c29 = arith.constant 29 : index
    %c3_37 = arith.constant 3 : index
    %80 = vector.load %arg4[%c29, %c3_37] : memref<44x128xf32, #tpu.memory_space<vmem>>, vector<1x16xf32>
    tpu.vector_store %arg4[%c29, %c3_37], %79 {strides = array<i32>} : memref<44x128xf32, #tpu.memory_space<vmem>>, vector<1x16xf32>,
    %81 = vector.extract_strided_slice %60 {offsets = [0, 80], sizes = [1, 16], strides = [1, 1]} : vector<1x256xf32> to vector<1x16xf32>
    %c8 = arith.constant 8 : index
    %c3_38 = arith.constant 3 : index
    %82 = vector.load %arg4[%c8, %c3_38] : memref<44x128xf32, #tpu.memory_space<vmem>>, vector<1x16xf32>
    tpu.vector_store %arg4[%c8, %c3_38], %81 {strides = array<i32>} : memref<44x128xf32, #tpu.memory_space<vmem>>, vector<1x16xf32>,
    %83 = vector.extract_strided_slice %58 {offsets = [0, 80], sizes = [1, 16], strides = [1, 1]} : vector<1x256xf32> to vector<1x16xf32>
    %c30 = arith.constant 30 : index
    %c3_39 = arith.constant 3 : index
    %84 = vector.load %arg4[%c30, %c3_39] : memref<44x128xf32, #tpu.memory_space<vmem>>, vector<1x16xf32>
    tpu.vector_store %arg4[%c30, %c3_39], %83 {strides = array<i32>} : memref<44x128xf32, #tpu.memory_space<vmem>>, vector<1x16xf32>,
    %85 = vector.extract_strided_slice %60 {offsets = [0, 96], sizes = [1, 16], strides = [1, 1]} : vector<1x256xf32> to vector<1x16xf32>
    %c9 = arith.constant 9 : index
    %c3_40 = arith.constant 3 : index
    %86 = vector.load %arg4[%c9, %c3_40] : memref<44x128xf32, #tpu.memory_space<vmem>>, vector<1x16xf32>
    tpu.vector_store %arg4[%c9, %c3_40], %85 {strides = array<i32>} : memref<44x128xf32, #tpu.memory_space<vmem>>, vector<1x16xf32>,
    %87 = vector.extract_strided_slice %58 {offsets = [0, 96], sizes = [1, 16], strides = [1, 1]} : vector<1x256xf32> to vector<1x16xf32>
    %c31 = arith.constant 31 : index
    %c3_41 = arith.constant 3 : index
    %88 = vector.load %arg4[%c31, %c3_41] : memref<44x128xf32, #tpu.memory_space<vmem>>, vector<1x16xf32>
    tpu.vector_store %arg4[%c31, %c3_41], %87 {strides = array<i32>} : memref<44x128xf32, #tpu.memory_space<vmem>>, vector<1x16xf32>,
    %89 = vector.extract_strided_slice %60 {offsets = [0, 112], sizes = [1, 16], strides = [1, 1]} : vector<1x256xf32> to vector<1x16xf32>
    %c10 = arith.constant 10 : index
    %c3_42 = arith.constant 3 : index
    %90 = vector.load %arg4[%c10, %c3_42] : memref<44x128xf32, #tpu.memory_space<vmem>>, vector<1x16xf32>
    tpu.vector_store %arg4[%c10, %c3_42], %89 {strides = array<i32>} : memref<44x128xf32, #tpu.memory_space<vmem>>, vector<1x16xf32>,
    %91 = vector.extract_strided_slice %58 {offsets = [0, 112], sizes = [1, 16], strides = [1, 1]} : vector<1x256xf32> to vector<1x16xf32>
    %c32 = arith.constant 32 : index
    %c3_43 = arith.constant 3 : index
    %92 = vector.load %arg4[%c32, %c3_43] : memref<44x128xf32, #tpu.memory_space<vmem>>, vector<1x16xf32>
    tpu.vector_store %arg4[%c32, %c3_43], %91 {strides = array<i32>} : memref<44x128xf32, #tpu.memory_space<vmem>>, vector<1x16xf32>,
    %93 = vector.extract_strided_slice %60 {offsets = [0, 128], sizes = [1, 16], strides = [1, 1]} : vector<1x256xf32> to vector<1x16xf32>
    %c11 = arith.constant 11 : index
    %c3_44 = arith.constant 3 : index
    %94 = vector.load %arg4[%c11, %c3_44] : memref<44x128xf32, #tpu.memory_space<vmem>>, vector<1x16xf32>
    tpu.vector_store %arg4[%c11, %c3_44], %93 {strides = array<i32>} : memref<44x128xf32, #tpu.memory_space<vmem>>, vector<1x16xf32>,
    %95 = vector.extract_strided_slice %58 {offsets = [0, 128], sizes = [1, 16], strides = [1, 1]} : vector<1x256xf32> to vector<1x16xf32>
    %c33 = arith.constant 33 : index
    %c3_45 = arith.constant 3 : index
    %96 = vector.load %arg4[%c33, %c3_45] : memref<44x128xf32, #tpu.memory_space<vmem>>, vector<1x16xf32>
    tpu.vector_store %arg4[%c33, %c3_45], %95 {strides = array<i32>} : memref<44x128xf32, #tpu.memory_space<vmem>>, vector<1x16xf32>,
    %97 = vector.extract_strided_slice %60 {offsets = [0, 144], sizes = [1, 16], strides = [1, 1]} : vector<1x256xf32> to vector<1x16xf32>
    %c12 = arith.constant 12 : index
    %c3_46 = arith.constant 3 : index
    %98 = vector.load %arg4[%c12, %c3_46] : memref<44x128xf32, #tpu.memory_space<vmem>>, vector<1x16xf32>
    tpu.vector_store %arg4[%c12, %c3_46], %97 {strides = array<i32>} : memref<44x128xf32, #tpu.memory_space<vmem>>, vector<1x16xf32>,
    %99 = vector.extract_strided_slice %58 {offsets = [0, 144], sizes = [1, 16], strides = [1, 1]} : vector<1x256xf32> to vector<1x16xf32>
    %c34 = arith.constant 34 : index
    %c3_47 = arith.constant 3 : index
    %100 = vector.load %arg4[%c34, %c3_47] : memref<44x128xf32, #tpu.memory_space<vmem>>, vector<1x16xf32>
    tpu.vector_store %arg4[%c34, %c3_47], %99 {strides = array<i32>} : memref<44x128xf32, #tpu.memory_space<vmem>>, vector<1x16xf32>,
    %101 = vector.extract_strided_slice %60 {offsets = [0, 160], sizes = [1, 16], strides = [1, 1]} : vector<1x256xf32> to vector<1x16xf32>
    %c13 = arith.constant 13 : index
    %c3_48 = arith.constant 3 : index
    %102 = vector.load %arg4[%c13, %c3_48] : memref<44x128xf32, #tpu.memory_space<vmem>>, vector<1x16xf32>
    tpu.vector_store %arg4[%c13, %c3_48], %101 {strides = array<i32>} : memref<44x128xf32, #tpu.memory_space<vmem>>, vector<1x16xf32>,
    %103 = vector.extract_strided_slice %58 {offsets = [0, 160], sizes = [1, 16], strides = [1, 1]} : vector<1x256xf32> to vector<1x16xf32>
    %c35 = arith.constant 35 : index
    %c3_49 = arith.constant 3 : index
    %104 = vector.load %arg4[%c35, %c3_49] : memref<44x128xf32, #tpu.memory_space<vmem>>, vector<1x16xf32>
    tpu.vector_store %arg4[%c35, %c3_49], %103 {strides = array<i32>} : memref<44x128xf32, #tpu.memory_space<vmem>>, vector<1x16xf32>,
    %105 = vector.extract_strided_slice %60 {offsets = [0, 176], sizes = [1, 16], strides = [1, 1]} : vector<1x256xf32> to vector<1x16xf32>
    %c14 = arith.constant 14 : index
    %c3_50 = arith.constant 3 : index
    %106 = vector.load %arg4[%c14, %c3_50] : memref<44x128xf32, #tpu.memory_space<vmem>>, vector<1x16xf32>
    tpu.vector_store %arg4[%c14, %c3_50], %105 {strides = array<i32>} : memref<44x128xf32, #tpu.memory_space<vmem>>, vector<1x16xf32>,
    %107 = vector.extract_strided_slice %58 {offsets = [0, 176], sizes = [1, 16], strides = [1, 1]} : vector<1x256xf32> to vector<1x16xf32>
    %c36 = arith.constant 36 : index
    %c3_51 = arith.constant 3 : index
    %108 = vector.load %arg4[%c36, %c3_51] : memref<44x128xf32, #tpu.memory_space<vmem>>, vector<1x16xf32>
    tpu.vector_store %arg4[%c36, %c3_51], %107 {strides = array<i32>} : memref<44x128xf32, #tpu.memory_space<vmem>>, vector<1x16xf32>,
    %109 = vector.extract_strided_slice %60 {offsets = [0, 192], sizes = [1, 16], strides = [1, 1]} : vector<1x256xf32> to vector<1x16xf32>
    %c15 = arith.constant 15 : index
    %c3_52 = arith.constant 3 : index
    %110 = vector.load %arg4[%c15, %c3_52] : memref<44x128xf32, #tpu.memory_space<vmem>>, vector<1x16xf32>
    tpu.vector_store %arg4[%c15, %c3_52], %109 {strides = array<i32>} : memref<44x128xf32, #tpu.memory_space<vmem>>, vector<1x16xf32>,
    %111 = vector.extract_strided_slice %58 {offsets = [0, 192], sizes = [1, 16], strides = [1, 1]} : vector<1x256xf32> to vector<1x16xf32>
    %c37 = arith.constant 37 : index
    %c3_53 = arith.constant 3 : index
    %112 = vector.load %arg4[%c37, %c3_53] : memref<44x128xf32, #tpu.memory_space<vmem>>, vector<1x16xf32>
    tpu.vector_store %arg4[%c37, %c3_53], %111 {strides = array<i32>} : memref<44x128xf32, #tpu.memory_space<vmem>>, vector<1x16xf32>,
    %113 = vector.extract_strided_slice %60 {offsets = [0, 208], sizes = [1, 16], strides = [1, 1]} : vector<1x256xf32> to vector<1x16xf32>
    %c16 = arith.constant 16 : index
    %c3_54 = arith.constant 3 : index
    %114 = vector.load %arg4[%c16, %c3_54] : memref<44x128xf32, #tpu.memory_space<vmem>>, vector<1x16xf32>
    tpu.vector_store %arg4[%c16, %c3_54], %113 {strides = array<i32>} : memref<44x128xf32, #tpu.memory_space<vmem>>, vector<1x16xf32>,
    %115 = vector.extract_strided_slice %58 {offsets = [0, 208], sizes = [1, 16], strides = [1, 1]} : vector<1x256xf32> to vector<1x16xf32>
    %c38 = arith.constant 38 : index
    %c3_55 = arith.constant 3 : index
    %116 = vector.load %arg4[%c38, %c3_55] : memref<44x128xf32, #tpu.memory_space<vmem>>, vector<1x16xf32>
    tpu.vector_store %arg4[%c38, %c3_55], %115 {strides = array<i32>} : memref<44x128xf32, #tpu.memory_space<vmem>>, vector<1x16xf32>,
    %117 = vector.extract_strided_slice %60 {offsets = [0, 224], sizes = [1, 16], strides = [1, 1]} : vector<1x256xf32> to vector<1x16xf32>
    %c17 = arith.constant 17 : index
    %c3_56 = arith.constant 3 : index
    %118 = vector.load %arg4[%c17, %c3_56] : memref<44x128xf32, #tpu.memory_space<vmem>>, vector<1x16xf32>
    tpu.vector_store %arg4[%c17, %c3_56], %117 {strides = array<i32>} : memref<44x128xf32, #tpu.memory_space<vmem>>, vector<1x16xf32>,
    %119 = vector.extract_strided_slice %58 {offsets = [0, 224], sizes = [1, 16], strides = [1, 1]} : vector<1x256xf32> to vector<1x16xf32>
    %c39 = arith.constant 39 : index
    %c3_57 = arith.constant 3 : index
    %120 = vector.load %arg4[%c39, %c3_57] : memref<44x128xf32, #tpu.memory_space<vmem>>, vector<1x16xf32>
    tpu.vector_store %arg4[%c39, %c3_57], %119 {strides = array<i32>} : memref<44x128xf32, #tpu.memory_space<vmem>>, vector<1x16xf32>,
    %121 = vector.extract_strided_slice %60 {offsets = [0, 240], sizes = [1, 16], strides = [1, 1]} : vector<1x256xf32> to vector<1x16xf32>
    %c18 = arith.constant 18 : index
    %c3_58 = arith.constant 3 : index
    %122 = vector.load %arg4[%c18, %c3_58] : memref<44x128xf32, #tpu.memory_space<vmem>>, vector<1x16xf32>
    tpu.vector_store %arg4[%c18, %c3_58], %121 {strides = array<i32>} : memref<44x128xf32, #tpu.memory_space<vmem>>, vector<1x16xf32>,
    %123 = vector.extract_strided_slice %58 {offsets = [0, 240], sizes = [1, 16], strides = [1, 1]} : vector<1x256xf32> to vector<1x16xf32>
    %c40 = arith.constant 40 : index
    %c3_59 = arith.constant 3 : index
    %124 = vector.load %arg4[%c40, %c3_59] : memref<44x128xf32, #tpu.memory_space<vmem>>, vector<1x16xf32>
    tpu.vector_store %arg4[%c40, %c3_59], %123 {strides = array<i32>} : memref<44x128xf32, #tpu.memory_space<vmem>>, vector<1x16xf32>,
    %cst_60 = arith.constant 0.000000e+00 : f32
    %125 = vector.broadcast %cst_60 : f32 to vector<16x128xf32>
    %cst_61 = arith.constant 0.000000e+00 : f32
    %126 = vector.broadcast %cst_61 : f32 to vector<16x128xf32>
    %cst_62 = arith.constant 0.000000e+00 : f32
    %127 = vector.broadcast %cst_62 : f32 to vector<16x128xf32>
    %cst_63 = arith.constant 0.000000e+00 : f32
    %128 = vector.broadcast %cst_63 : f32 to vector<16x128xf32>
    %cst_64 = arith.constant 0.000000e+00 : f32
    %129 = vector.broadcast %cst_64 : f32 to vector<16x128xf32>
    %cst_65 = arith.constant 0.000000e+00 : f32
    %130 = vector.broadcast %cst_65 : f32 to vector<16x128xf32>
    %cst_66 = arith.constant 0.000000e+00 : f32
    %131 = vector.broadcast %cst_66 : f32 to vector<16x128xf32>
    %c0_67 = arith.constant 0 : index
    %c0_68 = arith.constant 0 : index
    %132 = vector.load %arg4[%c0_67, %c0_68] : memref<44x128xf32, #tpu.memory_space<vmem>>, vector<16x128xf32>
    %c0_69 = arith.constant 0 : index
    %133 = memref.load %arg2[%c0_69] : memref<98xf32, #tpu.memory_space<smem>>
    %134 = vector.broadcast %133 : f32 to vector<16x128xf32>
    %135 = arith.mulf %134, %132 : vector<16x128xf32>
    %136 = arith.addf %125, %135 : vector<16x128xf32>
    %c1 = arith.constant 1 : index
    %137 = memref.load %arg2[%c1] : memref<98xf32, #tpu.memory_space<smem>>
    %138 = vector.broadcast %137 : f32 to vector<16x128xf32>
    %139 = arith.mulf %138, %132 : vector<16x128xf32>
    %140 = arith.addf %126, %139 : vector<16x128xf32>
    %c2 = arith.constant 2 : index
    %141 = memref.load %arg2[%c2] : memref<98xf32, #tpu.memory_space<smem>>
    %142 = vector.broadcast %141 : f32 to vector<16x128xf32>
    %143 = arith.mulf %142, %132 : vector<16x128xf32>
    %144 = arith.addf %127, %143 : vector<16x128xf32>
    %c3_70 = arith.constant 3 : index
    %145 = memref.load %arg2[%c3_70] : memref<98xf32, #tpu.memory_space<smem>>
    %146 = vector.broadcast %145 : f32 to vector<16x128xf32>
    %147 = arith.mulf %146, %132 : vector<16x128xf32>
    %148 = arith.addf %128, %147 : vector<16x128xf32>
    %c4_71 = arith.constant 4 : index
    %149 = memref.load %arg2[%c4_71] : memref<98xf32, #tpu.memory_space<smem>>
    %150 = vector.broadcast %149 : f32 to vector<16x128xf32>
    %151 = arith.mulf %150, %132 : vector<16x128xf32>
    %152 = arith.addf %129, %151 : vector<16x128xf32>
    %c5_72 = arith.constant 5 : index
    %153 = memref.load %arg2[%c5_72] : memref<98xf32, #tpu.memory_space<smem>>
    %154 = vector.broadcast %153 : f32 to vector<16x128xf32>
    %155 = arith.mulf %154, %132 : vector<16x128xf32>
    %156 = arith.addf %130, %155 : vector<16x128xf32>
    %c6_73 = arith.constant 6 : index
    %157 = memref.load %arg2[%c6_73] : memref<98xf32, #tpu.memory_space<smem>>
    %158 = vector.broadcast %157 : f32 to vector<16x128xf32>
    %159 = arith.mulf %158, %132 : vector<16x128xf32>
    %160 = arith.addf %131, %159 : vector<16x128xf32>
    %c1_74 = arith.constant 1 : index
    %c0_75 = arith.constant 0 : index
    %161 = vector.load %arg4[%c1_74, %c0_75] : memref<44x128xf32, #tpu.memory_space<vmem>>, vector<16x128xf32>
    %c7_76 = arith.constant 7 : index
    %162 = memref.load %arg2[%c7_76] : memref<98xf32, #tpu.memory_space<smem>>
    %163 = vector.broadcast %162 : f32 to vector<16x128xf32>
    %164 = arith.mulf %163, %161 : vector<16x128xf32>
    %165 = arith.addf %136, %164 : vector<16x128xf32>
    %c8_77 = arith.constant 8 : index
    %166 = memref.load %arg2[%c8_77] : memref<98xf32, #tpu.memory_space<smem>>
    %167 = vector.broadcast %166 : f32 to vector<16x128xf32>
    %168 = arith.mulf %167, %161 : vector<16x128xf32>
    %169 = arith.addf %140, %168 : vector<16x128xf32>
    %c9_78 = arith.constant 9 : index
    %170 = memref.load %arg2[%c9_78] : memref<98xf32, #tpu.memory_space<smem>>
    %171 = vector.broadcast %170 : f32 to vector<16x128xf32>
    %172 = arith.mulf %171, %161 : vector<16x128xf32>
    %173 = arith.addf %144, %172 : vector<16x128xf32>
    %c10_79 = arith.constant 10 : index
    %174 = memref.load %arg2[%c10_79] : memref<98xf32, #tpu.memory_space<smem>>
    %175 = vector.broadcast %174 : f32 to vector<16x128xf32>
    %176 = arith.mulf %175, %161 : vector<16x128xf32>
    %177 = arith.addf %148, %176 : vector<16x128xf32>
    %c11_80 = arith.constant 11 : index
    %178 = memref.load %arg2[%c11_80] : memref<98xf32, #tpu.memory_space<smem>>
    %179 = vector.broadcast %178 : f32 to vector<16x128xf32>
    %180 = arith.mulf %179, %161 : vector<16x128xf32>
    %181 = arith.addf %152, %180 : vector<16x128xf32>
    %c12_81 = arith.constant 12 : index
    %182 = memref.load %arg2[%c12_81] : memref<98xf32, #tpu.memory_space<smem>>
    %183 = vector.broadcast %182 : f32 to vector<16x128xf32>
    %184 = arith.mulf %183, %161 : vector<16x128xf32>
    %185 = arith.addf %156, %184 : vector<16x128xf32>
    %c13_82 = arith.constant 13 : index
    %186 = memref.load %arg2[%c13_82] : memref<98xf32, #tpu.memory_space<smem>>
    %187 = vector.broadcast %186 : f32 to vector<16x128xf32>
    %188 = arith.mulf %187, %161 : vector<16x128xf32>
    %189 = arith.addf %160, %188 : vector<16x128xf32>
    %c2_83 = arith.constant 2 : index
    %c0_84 = arith.constant 0 : index
    %190 = vector.load %arg4[%c2_83, %c0_84] : memref<44x128xf32, #tpu.memory_space<vmem>>, vector<16x128xf32>
    %c14_85 = arith.constant 14 : index
    %191 = memref.load %arg2[%c14_85] : memref<98xf32, #tpu.memory_space<smem>>
    %192 = vector.broadcast %191 : f32 to vector<16x128xf32>
    %193 = arith.mulf %192, %190 : vector<16x128xf32>
    %194 = arith.addf %165, %193 : vector<16x128xf32>
    %c15_86 = arith.constant 15 : index
    %195 = memref.load %arg2[%c15_86] : memref<98xf32, #tpu.memory_space<smem>>
    %196 = vector.broadcast %195 : f32 to vector<16x128xf32>
    %197 = arith.mulf %196, %190 : vector<16x128xf32>
    %198 = arith.addf %169, %197 : vector<16x128xf32>
    %c16_87 = arith.constant 16 : index
    %199 = memref.load %arg2[%c16_87] : memref<98xf32, #tpu.memory_space<smem>>
    %200 = vector.broadcast %199 : f32 to vector<16x128xf32>
    %201 = arith.mulf %200, %190 : vector<16x128xf32>
    %202 = arith.addf %173, %201 : vector<16x128xf32>
    %c17_88 = arith.constant 17 : index
    %203 = memref.load %arg2[%c17_88] : memref<98xf32, #tpu.memory_space<smem>>
    %204 = vector.broadcast %203 : f32 to vector<16x128xf32>
    %205 = arith.mulf %204, %190 : vector<16x128xf32>
    %206 = arith.addf %177, %205 : vector<16x128xf32>
    %c18_89 = arith.constant 18 : index
    %207 = memref.load %arg2[%c18_89] : memref<98xf32, #tpu.memory_space<smem>>
    %208 = vector.broadcast %207 : f32 to vector<16x128xf32>
    %209 = arith.mulf %208, %190 : vector<16x128xf32>
    %210 = arith.addf %181, %209 : vector<16x128xf32>
    %c19 = arith.constant 19 : index
    %211 = memref.load %arg2[%c19] : memref<98xf32, #tpu.memory_space<smem>>
    %212 = vector.broadcast %211 : f32 to vector<16x128xf32>
    %213 = arith.mulf %212, %190 : vector<16x128xf32>
    %214 = arith.addf %185, %213 : vector<16x128xf32>
    %c20 = arith.constant 20 : index
    %215 = memref.load %arg2[%c20] : memref<98xf32, #tpu.memory_space<smem>>
    %216 = vector.broadcast %215 : f32 to vector<16x128xf32>
    %217 = arith.mulf %216, %190 : vector<16x128xf32>
    %218 = arith.addf %189, %217 : vector<16x128xf32>
    %c3_90 = arith.constant 3 : index
    %c0_91 = arith.constant 0 : index
    %219 = vector.load %arg4[%c3_90, %c0_91] : memref<44x128xf32, #tpu.memory_space<vmem>>, vector<16x128xf32>
    %c21 = arith.constant 21 : index
    %220 = memref.load %arg2[%c21] : memref<98xf32, #tpu.memory_space<smem>>
    %221 = vector.broadcast %220 : f32 to vector<16x128xf32>
    %222 = arith.mulf %221, %219 : vector<16x128xf32>
    %223 = arith.addf %194, %222 : vector<16x128xf32>
    %c22 = arith.constant 22 : index
    %224 = memref.load %arg2[%c22] : memref<98xf32, #tpu.memory_space<smem>>
    %225 = vector.broadcast %224 : f32 to vector<16x128xf32>
    %226 = arith.mulf %225, %219 : vector<16x128xf32>
    %227 = arith.addf %198, %226 : vector<16x128xf32>
    %c23 = arith.constant 23 : index
    %228 = memref.load %arg2[%c23] : memref<98xf32, #tpu.memory_space<smem>>
    %229 = vector.broadcast %228 : f32 to vector<16x128xf32>
    %230 = arith.mulf %229, %219 : vector<16x128xf32>
    %231 = arith.addf %202, %230 : vector<16x128xf32>
    %c24 = arith.constant 24 : index
    %232 = memref.load %arg2[%c24] : memref<98xf32, #tpu.memory_space<smem>>
    %233 = vector.broadcast %232 : f32 to vector<16x128xf32>
    %234 = arith.mulf %233, %219 : vector<16x128xf32>
    %235 = arith.addf %206, %234 : vector<16x128xf32>
    %c25_92 = arith.constant 25 : index
    %236 = memref.load %arg2[%c25_92] : memref<98xf32, #tpu.memory_space<smem>>
    %237 = vector.broadcast %236 : f32 to vector<16x128xf32>
    %238 = arith.mulf %237, %219 : vector<16x128xf32>
    %239 = arith.addf %210, %238 : vector<16x128xf32>
    %c26_93 = arith.constant 26 : index
    %240 = memref.load %arg2[%c26_93] : memref<98xf32, #tpu.memory_space<smem>>
    %241 = vector.broadcast %240 : f32 to vector<16x128xf32>
    %242 = arith.mulf %241, %219 : vector<16x128xf32>
    %243 = arith.addf %214, %242 : vector<16x128xf32>
    %c27_94 = arith.constant 27 : index
    %244 = memref.load %arg2[%c27_94] : memref<98xf32, #tpu.memory_space<smem>>
    %245 = vector.broadcast %244 : f32 to vector<16x128xf32>
    %246 = arith.mulf %245, %219 : vector<16x128xf32>
    %247 = arith.addf %218, %246 : vector<16x128xf32>
    %c4_95 = arith.constant 4 : index
    %c0_96 = arith.constant 0 : index
    %248 = vector.load %arg4[%c4_95, %c0_96] : memref<44x128xf32, #tpu.memory_space<vmem>>, vector<16x128xf32>
    %c28_97 = arith.constant 28 : index
    %249 = memref.load %arg2[%c28_97] : memref<98xf32, #tpu.memory_space<smem>>
    %250 = vector.broadcast %249 : f32 to vector<16x128xf32>
    %251 = arith.mulf %250, %248 : vector<16x128xf32>
    %252 = arith.addf %223, %251 : vector<16x128xf32>
    %c29_98 = arith.constant 29 : index
    %253 = memref.load %arg2[%c29_98] : memref<98xf32, #tpu.memory_space<smem>>
    %254 = vector.broadcast %253 : f32 to vector<16x128xf32>
    %255 = arith.mulf %254, %248 : vector<16x128xf32>
    %256 = arith.addf %227, %255 : vector<16x128xf32>
    %c30_99 = arith.constant 30 : index
    %257 = memref.load %arg2[%c30_99] : memref<98xf32, #tpu.memory_space<smem>>
    %258 = vector.broadcast %257 : f32 to vector<16x128xf32>
    %259 = arith.mulf %258, %248 : vector<16x128xf32>
    %260 = arith.addf %231, %259 : vector<16x128xf32>
    %c31_100 = arith.constant 31 : index
    %261 = memref.load %arg2[%c31_100] : memref<98xf32, #tpu.memory_space<smem>>
    %262 = vector.broadcast %261 : f32 to vector<16x128xf32>
    %263 = arith.mulf %262, %248 : vector<16x128xf32>
    %264 = arith.addf %235, %263 : vector<16x128xf32>
    %c32_101 = arith.constant 32 : index
    %265 = memref.load %arg2[%c32_101] : memref<98xf32, #tpu.memory_space<smem>>
    %266 = vector.broadcast %265 : f32 to vector<16x128xf32>
    %267 = arith.mulf %266, %248 : vector<16x128xf32>
    %268 = arith.addf %239, %267 : vector<16x128xf32>
    %c33_102 = arith.constant 33 : index
    %269 = memref.load %arg2[%c33_102] : memref<98xf32, #tpu.memory_space<smem>>
    %270 = vector.broadcast %269 : f32 to vector<16x128xf32>
    %271 = arith.mulf %270, %248 : vector<16x128xf32>
    %272 = arith.addf %243, %271 : vector<16x128xf32>
    %c34_103 = arith.constant 34 : index
    %273 = memref.load %arg2[%c34_103] : memref<98xf32, #tpu.memory_space<smem>>
    %274 = vector.broadcast %273 : f32 to vector<16x128xf32>
    %275 = arith.mulf %274, %248 : vector<16x128xf32>
    %276 = arith.addf %247, %275 : vector<16x128xf32>
    %c5_104 = arith.constant 5 : index
    %c0_105 = arith.constant 0 : index
    %277 = vector.load %arg4[%c5_104, %c0_105] : memref<44x128xf32, #tpu.memory_space<vmem>>, vector<16x128xf32>
    %c35_106 = arith.constant 35 : index
    %278 = memref.load %arg2[%c35_106] : memref<98xf32, #tpu.memory_space<smem>>
    %279 = vector.broadcast %278 : f32 to vector<16x128xf32>
    %280 = arith.mulf %279, %277 : vector<16x128xf32>
    %281 = arith.addf %252, %280 : vector<16x128xf32>
    %c36_107 = arith.constant 36 : index
    %282 = memref.load %arg2[%c36_107] : memref<98xf32, #tpu.memory_space<smem>>
    %283 = vector.broadcast %282 : f32 to vector<16x128xf32>
    %284 = arith.mulf %283, %277 : vector<16x128xf32>
    %285 = arith.addf %256, %284 : vector<16x128xf32>
    %c37_108 = arith.constant 37 : index
    %286 = memref.load %arg2[%c37_108] : memref<98xf32, #tpu.memory_space<smem>>
    %287 = vector.broadcast %286 : f32 to vector<16x128xf32>
    %288 = arith.mulf %287, %277 : vector<16x128xf32>
    %289 = arith.addf %260, %288 : vector<16x128xf32>
    %c38_109 = arith.constant 38 : index
    %290 = memref.load %arg2[%c38_109] : memref<98xf32, #tpu.memory_space<smem>>
    %291 = vector.broadcast %290 : f32 to vector<16x128xf32>
    %292 = arith.mulf %291, %277 : vector<16x128xf32>
    %293 = arith.addf %264, %292 : vector<16x128xf32>
    %c39_110 = arith.constant 39 : index
    %294 = memref.load %arg2[%c39_110] : memref<98xf32, #tpu.memory_space<smem>>
    %295 = vector.broadcast %294 : f32 to vector<16x128xf32>
    %296 = arith.mulf %295, %277 : vector<16x128xf32>
    %297 = arith.addf %268, %296 : vector<16x128xf32>
    %c40_111 = arith.constant 40 : index
    %298 = memref.load %arg2[%c40_111] : memref<98xf32, #tpu.memory_space<smem>>
    %299 = vector.broadcast %298 : f32 to vector<16x128xf32>
    %300 = arith.mulf %299, %277 : vector<16x128xf32>
    %301 = arith.addf %272, %300 : vector<16x128xf32>
    %c41 = arith.constant 41 : index
    %302 = memref.load %arg2[%c41] : memref<98xf32, #tpu.memory_space<smem>>
    %303 = vector.broadcast %302 : f32 to vector<16x128xf32>
    %304 = arith.mulf %303, %277 : vector<16x128xf32>
    %305 = arith.addf %276, %304 : vector<16x128xf32>
    %c6_112 = arith.constant 6 : index
    %c0_113 = arith.constant 0 : index
    %306 = vector.load %arg4[%c6_112, %c0_113] : memref<44x128xf32, #tpu.memory_space<vmem>>, vector<16x128xf32>
    %c42 = arith.constant 42 : index
    %307 = memref.load %arg2[%c42] : memref<98xf32, #tpu.memory_space<smem>>
    %308 = vector.broadcast %307 : f32 to vector<16x128xf32>
    %309 = arith.mulf %308, %306 : vector<16x128xf32>
    %310 = arith.addf %281, %309 : vector<16x128xf32>
    %c43 = arith.constant 43 : index
    %311 = memref.load %arg2[%c43] : memref<98xf32, #tpu.memory_space<smem>>
    %312 = vector.broadcast %311 : f32 to vector<16x128xf32>
    %313 = arith.mulf %312, %306 : vector<16x128xf32>
    %314 = arith.addf %285, %313 : vector<16x128xf32>
    %c44 = arith.constant 44 : index
    %315 = memref.load %arg2[%c44] : memref<98xf32, #tpu.memory_space<smem>>
    %316 = vector.broadcast %315 : f32 to vector<16x128xf32>
    %317 = arith.mulf %316, %306 : vector<16x128xf32>
    %318 = arith.addf %289, %317 : vector<16x128xf32>
    %c45 = arith.constant 45 : index
    %319 = memref.load %arg2[%c45] : memref<98xf32, #tpu.memory_space<smem>>
    %320 = vector.broadcast %319 : f32 to vector<16x128xf32>
    %321 = arith.mulf %320, %306 : vector<16x128xf32>
    %322 = arith.addf %293, %321 : vector<16x128xf32>
    %c46 = arith.constant 46 : index
    %323 = memref.load %arg2[%c46] : memref<98xf32, #tpu.memory_space<smem>>
    %324 = vector.broadcast %323 : f32 to vector<16x128xf32>
    %325 = arith.mulf %324, %306 : vector<16x128xf32>
    %326 = arith.addf %297, %325 : vector<16x128xf32>
    %c47 = arith.constant 47 : index
    %327 = memref.load %arg2[%c47] : memref<98xf32, #tpu.memory_space<smem>>
    %328 = vector.broadcast %327 : f32 to vector<16x128xf32>
    %329 = arith.mulf %328, %306 : vector<16x128xf32>
    %330 = arith.addf %301, %329 : vector<16x128xf32>
    %c48 = arith.constant 48 : index
    %331 = memref.load %arg2[%c48] : memref<98xf32, #tpu.memory_space<smem>>
    %332 = vector.broadcast %331 : f32 to vector<16x128xf32>
    %333 = arith.mulf %332, %306 : vector<16x128xf32>
    %334 = arith.addf %305, %333 : vector<16x128xf32>
    %c22_114 = arith.constant 22 : index
    %c0_115 = arith.constant 0 : index
    %335 = vector.load %arg4[%c22_114, %c0_115] : memref<44x128xf32, #tpu.memory_space<vmem>>, vector<16x128xf32>
    %c49 = arith.constant 49 : index
    %336 = memref.load %arg2[%c49] : memref<98xf32, #tpu.memory_space<smem>>
    %337 = vector.broadcast %336 : f32 to vector<16x128xf32>
    %338 = arith.mulf %337, %335 : vector<16x128xf32>
    %339 = arith.addf %310, %338 : vector<16x128xf32>
    %c50 = arith.constant 50 : index
    %340 = memref.load %arg2[%c50] : memref<98xf32, #tpu.memory_space<smem>>
    %341 = vector.broadcast %340 : f32 to vector<16x128xf32>
    %342 = arith.mulf %341, %335 : vector<16x128xf32>
    %343 = arith.addf %314, %342 : vector<16x128xf32>
    %c51 = arith.constant 51 : index
    %344 = memref.load %arg2[%c51] : memref<98xf32, #tpu.memory_space<smem>>
    %345 = vector.broadcast %344 : f32 to vector<16x128xf32>
    %346 = arith.mulf %345, %335 : vector<16x128xf32>
    %347 = arith.addf %318, %346 : vector<16x128xf32>
    %c52 = arith.constant 52 : index
    %348 = memref.load %arg2[%c52] : memref<98xf32, #tpu.memory_space<smem>>
    %349 = vector.broadcast %348 : f32 to vector<16x128xf32>
    %350 = arith.mulf %349, %335 : vector<16x128xf32>
    %351 = arith.addf %322, %350 : vector<16x128xf32>
    %c53 = arith.constant 53 : index
    %352 = memref.load %arg2[%c53] : memref<98xf32, #tpu.memory_space<smem>>
    %353 = vector.broadcast %352 : f32 to vector<16x128xf32>
    %354 = arith.mulf %353, %335 : vector<16x128xf32>
    %355 = arith.addf %326, %354 : vector<16x128xf32>
    %c54 = arith.constant 54 : index
    %356 = memref.load %arg2[%c54] : memref<98xf32, #tpu.memory_space<smem>>
    %357 = vector.broadcast %356 : f32 to vector<16x128xf32>
    %358 = arith.mulf %357, %335 : vector<16x128xf32>
    %359 = arith.addf %330, %358 : vector<16x128xf32>
    %c55 = arith.constant 55 : index
    %360 = memref.load %arg2[%c55] : memref<98xf32, #tpu.memory_space<smem>>
    %361 = vector.broadcast %360 : f32 to vector<16x128xf32>
    %362 = arith.mulf %361, %335 : vector<16x128xf32>
    %363 = arith.addf %334, %362 : vector<16x128xf32>
    %c23_116 = arith.constant 23 : index
    %c0_117 = arith.constant 0 : index
    %364 = vector.load %arg4[%c23_116, %c0_117] : memref<44x128xf32, #tpu.memory_space<vmem>>, vector<16x128xf32>
    %c56 = arith.constant 56 : index
    %365 = memref.load %arg2[%c56] : memref<98xf32, #tpu.memory_space<smem>>
    %366 = vector.broadcast %365 : f32 to vector<16x128xf32>
    %367 = arith.mulf %366, %364 : vector<16x128xf32>
    %368 = arith.addf %339, %367 : vector<16x128xf32>
    %c57 = arith.constant 57 : index
    %369 = memref.load %arg2[%c57] : memref<98xf32, #tpu.memory_space<smem>>
    %370 = vector.broadcast %369 : f32 to vector<16x128xf32>
    %371 = arith.mulf %370, %364 : vector<16x128xf32>
    %372 = arith.addf %343, %371 : vector<16x128xf32>
    %c58 = arith.constant 58 : index
    %373 = memref.load %arg2[%c58] : memref<98xf32, #tpu.memory_space<smem>>
    %374 = vector.broadcast %373 : f32 to vector<16x128xf32>
    %375 = arith.mulf %374, %364 : vector<16x128xf32>
    %376 = arith.addf %347, %375 : vector<16x128xf32>
    %c59 = arith.constant 59 : index
    %377 = memref.load %arg2[%c59] : memref<98xf32, #tpu.memory_space<smem>>
    %378 = vector.broadcast %377 : f32 to vector<16x128xf32>
    %379 = arith.mulf %378, %364 : vector<16x128xf32>
    %380 = arith.addf %351, %379 : vector<16x128xf32>
    %c60 = arith.constant 60 : index
    %381 = memref.load %arg2[%c60] : memref<98xf32, #tpu.memory_space<smem>>
    %382 = vector.broadcast %381 : f32 to vector<16x128xf32>
    %383 = arith.mulf %382, %364 : vector<16x128xf32>
    %384 = arith.addf %355, %383 : vector<16x128xf32>
    %c61 = arith.constant 61 : index
    %385 = memref.load %arg2[%c61] : memref<98xf32, #tpu.memory_space<smem>>
    %386 = vector.broadcast %385 : f32 to vector<16x128xf32>
    %387 = arith.mulf %386, %364 : vector<16x128xf32>
    %388 = arith.addf %359, %387 : vector<16x128xf32>
    %c62 = arith.constant 62 : index
    %389 = memref.load %arg2[%c62] : memref<98xf32, #tpu.memory_space<smem>>
    %390 = vector.broadcast %389 : f32 to vector<16x128xf32>
    %391 = arith.mulf %390, %364 : vector<16x128xf32>
    %392 = arith.addf %363, %391 : vector<16x128xf32>
    %c24_118 = arith.constant 24 : index
    %c0_119 = arith.constant 0 : index
    %393 = vector.load %arg4[%c24_118, %c0_119] : memref<44x128xf32, #tpu.memory_space<vmem>>, vector<16x128xf32>
    %c63 = arith.constant 63 : index
    %394 = memref.load %arg2[%c63] : memref<98xf32, #tpu.memory_space<smem>>
    %395 = vector.broadcast %394 : f32 to vector<16x128xf32>
    %396 = arith.mulf %395, %393 : vector<16x128xf32>
    %397 = arith.addf %368, %396 : vector<16x128xf32>
    %c64 = arith.constant 64 : index
    %398 = memref.load %arg2[%c64] : memref<98xf32, #tpu.memory_space<smem>>
    %399 = vector.broadcast %398 : f32 to vector<16x128xf32>
    %400 = arith.mulf %399, %393 : vector<16x128xf32>
    %401 = arith.addf %372, %400 : vector<16x128xf32>
    %c65 = arith.constant 65 : index
    %402 = memref.load %arg2[%c65] : memref<98xf32, #tpu.memory_space<smem>>
    %403 = vector.broadcast %402 : f32 to vector<16x128xf32>
    %404 = arith.mulf %403, %393 : vector<16x128xf32>
    %405 = arith.addf %376, %404 : vector<16x128xf32>
    %c66 = arith.constant 66 : index
    %406 = memref.load %arg2[%c66] : memref<98xf32, #tpu.memory_space<smem>>
    %407 = vector.broadcast %406 : f32 to vector<16x128xf32>
    %408 = arith.mulf %407, %393 : vector<16x128xf32>
    %409 = arith.addf %380, %408 : vector<16x128xf32>
    %c67 = arith.constant 67 : index
    %410 = memref.load %arg2[%c67] : memref<98xf32, #tpu.memory_space<smem>>
    %411 = vector.broadcast %410 : f32 to vector<16x128xf32>
    %412 = arith.mulf %411, %393 : vector<16x128xf32>
    %413 = arith.addf %384, %412 : vector<16x128xf32>
    %c68 = arith.constant 68 : index
    %414 = memref.load %arg2[%c68] : memref<98xf32, #tpu.memory_space<smem>>
    %415 = vector.broadcast %414 : f32 to vector<16x128xf32>
    %416 = arith.mulf %415, %393 : vector<16x128xf32>
    %417 = arith.addf %388, %416 : vector<16x128xf32>
    %c69 = arith.constant 69 : index
    %418 = memref.load %arg2[%c69] : memref<98xf32, #tpu.memory_space<smem>>
    %419 = vector.broadcast %418 : f32 to vector<16x128xf32>
    %420 = arith.mulf %419, %393 : vector<16x128xf32>
    %421 = arith.addf %392, %420 : vector<16x128xf32>
    %c25_120 = arith.constant 25 : index
    %c0_121 = arith.constant 0 : index
    %422 = vector.load %arg4[%c25_120, %c0_121] : memref<44x128xf32, #tpu.memory_space<vmem>>, vector<16x128xf32>
    %c70 = arith.constant 70 : index
    %423 = memref.load %arg2[%c70] : memref<98xf32, #tpu.memory_space<smem>>
    %424 = vector.broadcast %423 : f32 to vector<16x128xf32>
    %425 = arith.mulf %424, %422 : vector<16x128xf32>
    %426 = arith.addf %397, %425 : vector<16x128xf32>
    %c71 = arith.constant 71 : index
    %427 = memref.load %arg2[%c71] : memref<98xf32, #tpu.memory_space<smem>>
    %428 = vector.broadcast %427 : f32 to vector<16x128xf32>
    %429 = arith.mulf %428, %422 : vector<16x128xf32>
    %430 = arith.addf %401, %429 : vector<16x128xf32>
    %c72 = arith.constant 72 : index
    %431 = memref.load %arg2[%c72] : memref<98xf32, #tpu.memory_space<smem>>
    %432 = vector.broadcast %431 : f32 to vector<16x128xf32>
    %433 = arith.mulf %432, %422 : vector<16x128xf32>
    %434 = arith.addf %405, %433 : vector<16x128xf32>
    %c73 = arith.constant 73 : index
    %435 = memref.load %arg2[%c73] : memref<98xf32, #tpu.memory_space<smem>>
    %436 = vector.broadcast %435 : f32 to vector<16x128xf32>
    %437 = arith.mulf %436, %422 : vector<16x128xf32>
    %438 = arith.addf %409, %437 : vector<16x128xf32>
    %c74 = arith.constant 74 : index
    %439 = memref.load %arg2[%c74] : memref<98xf32, #tpu.memory_space<smem>>
    %440 = vector.broadcast %439 : f32 to vector<16x128xf32>
    %441 = arith.mulf %440, %422 : vector<16x128xf32>
    %442 = arith.addf %413, %441 : vector<16x128xf32>
    %c75 = arith.constant 75 : index
    %443 = memref.load %arg2[%c75] : memref<98xf32, #tpu.memory_space<smem>>
    %444 = vector.broadcast %443 : f32 to vector<16x128xf32>
    %445 = arith.mulf %444, %422 : vector<16x128xf32>
    %446 = arith.addf %417, %445 : vector<16x128xf32>
    %c76 = arith.constant 76 : index
    %447 = memref.load %arg2[%c76] : memref<98xf32, #tpu.memory_space<smem>>
    %448 = vector.broadcast %447 : f32 to vector<16x128xf32>
    %449 = arith.mulf %448, %422 : vector<16x128xf32>
    %450 = arith.addf %421, %449 : vector<16x128xf32>
    %c26_122 = arith.constant 26 : index
    %c0_123 = arith.constant 0 : index
    %451 = vector.load %arg4[%c26_122, %c0_123] : memref<44x128xf32, #tpu.memory_space<vmem>>, vector<16x128xf32>
    %c77 = arith.constant 77 : index
    %452 = memref.load %arg2[%c77] : memref<98xf32, #tpu.memory_space<smem>>
    %453 = vector.broadcast %452 : f32 to vector<16x128xf32>
    %454 = arith.mulf %453, %451 : vector<16x128xf32>
    %455 = arith.addf %426, %454 : vector<16x128xf32>
    %c78 = arith.constant 78 : index
    %456 = memref.load %arg2[%c78] : memref<98xf32, #tpu.memory_space<smem>>
    %457 = vector.broadcast %456 : f32 to vector<16x128xf32>
    %458 = arith.mulf %457, %451 : vector<16x128xf32>
    %459 = arith.addf %430, %458 : vector<16x128xf32>
    %c79 = arith.constant 79 : index
    %460 = memref.load %arg2[%c79] : memref<98xf32, #tpu.memory_space<smem>>
    %461 = vector.broadcast %460 : f32 to vector<16x128xf32>
    %462 = arith.mulf %461, %451 : vector<16x128xf32>
    %463 = arith.addf %434, %462 : vector<16x128xf32>
    %c80 = arith.constant 80 : index
    %464 = memref.load %arg2[%c80] : memref<98xf32, #tpu.memory_space<smem>>
    %465 = vector.broadcast %464 : f32 to vector<16x128xf32>
    %466 = arith.mulf %465, %451 : vector<16x128xf32>
    %467 = arith.addf %438, %466 : vector<16x128xf32>
    %c81 = arith.constant 81 : index
    %468 = memref.load %arg2[%c81] : memref<98xf32, #tpu.memory_space<smem>>
    %469 = vector.broadcast %468 : f32 to vector<16x128xf32>
    %470 = arith.mulf %469, %451 : vector<16x128xf32>
    %471 = arith.addf %442, %470 : vector<16x128xf32>
    %c82 = arith.constant 82 : index
    %472 = memref.load %arg2[%c82] : memref<98xf32, #tpu.memory_space<smem>>
    %473 = vector.broadcast %472 : f32 to vector<16x128xf32>
    %474 = arith.mulf %473, %451 : vector<16x128xf32>
    %475 = arith.addf %446, %474 : vector<16x128xf32>
    %c83 = arith.constant 83 : index
    %476 = memref.load %arg2[%c83] : memref<98xf32, #tpu.memory_space<smem>>
    %477 = vector.broadcast %476 : f32 to vector<16x128xf32>
    %478 = arith.mulf %477, %451 : vector<16x128xf32>
    %479 = arith.addf %450, %478 : vector<16x128xf32>
    %c27_124 = arith.constant 27 : index
    %c0_125 = arith.constant 0 : index
    %480 = vector.load %arg4[%c27_124, %c0_125] : memref<44x128xf32, #tpu.memory_space<vmem>>, vector<16x128xf32>
    %c84 = arith.constant 84 : index
    %481 = memref.load %arg2[%c84] : memref<98xf32, #tpu.memory_space<smem>>
    %482 = vector.broadcast %481 : f32 to vector<16x128xf32>
    %483 = arith.mulf %482, %480 : vector<16x128xf32>
    %484 = arith.addf %455, %483 : vector<16x128xf32>
    %c85 = arith.constant 85 : index
    %485 = memref.load %arg2[%c85] : memref<98xf32, #tpu.memory_space<smem>>
    %486 = vector.broadcast %485 : f32 to vector<16x128xf32>
    %487 = arith.mulf %486, %480 : vector<16x128xf32>
    %488 = arith.addf %459, %487 : vector<16x128xf32>
    %c86 = arith.constant 86 : index
    %489 = memref.load %arg2[%c86] : memref<98xf32, #tpu.memory_space<smem>>
    %490 = vector.broadcast %489 : f32 to vector<16x128xf32>
    %491 = arith.mulf %490, %480 : vector<16x128xf32>
    %492 = arith.addf %463, %491 : vector<16x128xf32>
    %c87 = arith.constant 87 : index
    %493 = memref.load %arg2[%c87] : memref<98xf32, #tpu.memory_space<smem>>
    %494 = vector.broadcast %493 : f32 to vector<16x128xf32>
    %495 = arith.mulf %494, %480 : vector<16x128xf32>
    %496 = arith.addf %467, %495 : vector<16x128xf32>
    %c88 = arith.constant 88 : index
    %497 = memref.load %arg2[%c88] : memref<98xf32, #tpu.memory_space<smem>>
    %498 = vector.broadcast %497 : f32 to vector<16x128xf32>
    %499 = arith.mulf %498, %480 : vector<16x128xf32>
    %500 = arith.addf %471, %499 : vector<16x128xf32>
    %c89 = arith.constant 89 : index
    %501 = memref.load %arg2[%c89] : memref<98xf32, #tpu.memory_space<smem>>
    %502 = vector.broadcast %501 : f32 to vector<16x128xf32>
    %503 = arith.mulf %502, %480 : vector<16x128xf32>
    %504 = arith.addf %475, %503 : vector<16x128xf32>
    %c90 = arith.constant 90 : index
    %505 = memref.load %arg2[%c90] : memref<98xf32, #tpu.memory_space<smem>>
    %506 = vector.broadcast %505 : f32 to vector<16x128xf32>
    %507 = arith.mulf %506, %480 : vector<16x128xf32>
    %508 = arith.addf %479, %507 : vector<16x128xf32>
    %c28_126 = arith.constant 28 : index
    %c0_127 = arith.constant 0 : index
    %509 = vector.load %arg4[%c28_126, %c0_127] : memref<44x128xf32, #tpu.memory_space<vmem>>, vector<16x128xf32>
    %c91 = arith.constant 91 : index
    %510 = memref.load %arg2[%c91] : memref<98xf32, #tpu.memory_space<smem>>
    %511 = vector.broadcast %510 : f32 to vector<16x128xf32>
    %512 = arith.mulf %511, %509 : vector<16x128xf32>
    %513 = arith.addf %484, %512 : vector<16x128xf32>
    %c92 = arith.constant 92 : index
    %514 = memref.load %arg2[%c92] : memref<98xf32, #tpu.memory_space<smem>>
    %515 = vector.broadcast %514 : f32 to vector<16x128xf32>
    %516 = arith.mulf %515, %509 : vector<16x128xf32>
    %517 = arith.addf %488, %516 : vector<16x128xf32>
    %c93 = arith.constant 93 : index
    %518 = memref.load %arg2[%c93] : memref<98xf32, #tpu.memory_space<smem>>
    %519 = vector.broadcast %518 : f32 to vector<16x128xf32>
    %520 = arith.mulf %519, %509 : vector<16x128xf32>
    %521 = arith.addf %492, %520 : vector<16x128xf32>
    %c94 = arith.constant 94 : index
    %522 = memref.load %arg2[%c94] : memref<98xf32, #tpu.memory_space<smem>>
    %523 = vector.broadcast %522 : f32 to vector<16x128xf32>
    %524 = arith.mulf %523, %509 : vector<16x128xf32>
    %525 = arith.addf %496, %524 : vector<16x128xf32>
    %c95 = arith.constant 95 : index
    %526 = memref.load %arg2[%c95] : memref<98xf32, #tpu.memory_space<smem>>
    %527 = vector.broadcast %526 : f32 to vector<16x128xf32>
    %528 = arith.mulf %527, %509 : vector<16x128xf32>
    %529 = arith.addf %500, %528 : vector<16x128xf32>
    %c96 = arith.constant 96 : index
    %530 = memref.load %arg2[%c96] : memref<98xf32, #tpu.memory_space<smem>>
    %531 = vector.broadcast %530 : f32 to vector<16x128xf32>
    %532 = arith.mulf %531, %509 : vector<16x128xf32>
    %533 = arith.addf %504, %532 : vector<16x128xf32>
    %c97 = arith.constant 97 : index
    %534 = memref.load %arg2[%c97] : memref<98xf32, #tpu.memory_space<smem>>
    %535 = vector.broadcast %534 : f32 to vector<16x128xf32>
    %536 = arith.mulf %535, %509 : vector<16x128xf32>
    %537 = arith.addf %508, %536 : vector<16x128xf32>
    %538 = vector.extract_strided_slice %513 {offsets = [0, 0], sizes = [16, 16], strides = [1, 1]} : vector<16x128xf32> to vector<16x16xf32>
    %539 = vector.extract_strided_slice %517 {offsets = [0, 1], sizes = [16, 16], strides = [1, 1]} : vector<16x128xf32> to vector<16x16xf32>
    %540 = arith.addf %538, %539 : vector<16x16xf32>
    %541 = vector.extract_strided_slice %521 {offsets = [0, 2], sizes = [16, 16], strides = [1, 1]} : vector<16x128xf32> to vector<16x16xf32>
    %542 = arith.addf %540, %541 : vector<16x16xf32>
    %543 = vector.extract_strided_slice %525 {offsets = [0, 3], sizes = [16, 16], strides = [1, 1]} : vector<16x128xf32> to vector<16x16xf32>
    %544 = arith.addf %542, %543 : vector<16x16xf32>
    %545 = vector.extract_strided_slice %529 {offsets = [0, 4], sizes = [16, 16], strides = [1, 1]} : vector<16x128xf32> to vector<16x16xf32>
    %546 = arith.addf %544, %545 : vector<16x16xf32>
    %547 = vector.extract_strided_slice %533 {offsets = [0, 5], sizes = [16, 16], strides = [1, 1]} : vector<16x128xf32> to vector<16x16xf32>
    %548 = arith.addf %546, %547 : vector<16x16xf32>
    %549 = vector.extract_strided_slice %537 {offsets = [0, 6], sizes = [16, 16], strides = [1, 1]} : vector<16x128xf32> to vector<16x16xf32>
    %550 = arith.addf %548, %549 : vector<16x16xf32>
    %551 = arith.negf %550 : vector<16x16xf32>
    %552 = math.exp %551 : vector<16x16xf32>
    %cst_128 = arith.constant 1.000000e+00 : f32
    %553 = vector.broadcast %cst_128 : f32 to vector<16x16xf32>
    %554 = arith.addf %553, %552 : vector<16x16xf32>
    %555 = arith.divf %553, %554 : vector<16x16xf32>
    %c0_129 = arith.constant 0 : index
    %c0_130 = arith.constant 0 : index
    %c0_131 = arith.constant 0 : index
    %c0_132 = arith.constant 0 : index
    %556 = vector.load %arg3[%c0_129, %c0_130, %c0_131, %c0_132] : memref<1x1x16x16xf32, #tpu.memory_space<vmem>>, vector<1x1x16x16xf32>
    %557 = vector.shape_cast %556 : vector<1x1x16x16xf32> to vector<16x16xf32>
    %558 = vector.shape_cast %555 : vector<16x16xf32> to vector<1x1x16x16xf32>
    tpu.vector_store %arg3[%c0_129, %c0_130, %c0_131, %c0_132], %558 {strides = array<i32>} : memref<1x1x16x16xf32, #tpu.memory_space<vmem>>, vector<1x1x16x16xf32>,
    return
  }
  func.func @transform_0(%arg0: i32) -> (i32, i32, i32) {
    %c0_i32 = arith.constant 0 : i32
    %c0_i32_0 = arith.constant 0 : i32
    %c0_i32_1 = arith.constant 0 : i32
    return %arg0, %c0_i32, %c0_i32_0 : i32, i32, i32
  }
  func.func @transform_1(%arg0: i32) -> i32 {
    %c0_i32 = arith.constant 0 : i32
    %c0_i32_0 = arith.constant 0 : i32
    return %c0_i32 : i32
  }
  func.func @transform_2(%arg0: i32) -> (i32, i32, i32, i32) {
    %c0_i32 = arith.constant 0 : i32
    %c0_i32_0 = arith.constant 0 : i32
    %c0_i32_1 = arith.constant 0 : i32
    %c0_i32_2 = arith.constant 0 : i32
    return %arg0, %c0_i32, %c0_i32_0, %c0_i32_1 : i32, i32, i32, i32
  }
}

</mosaic_0001>

<bundles_post_ra>
// kernel: tpu_custom_call.1
= control target key start
LH: loop header
LB: loop body
LE: loop exit
PB: predicated region body
PF: predicated region fallthrough
CT: control target
= control target key end

     0   :  { %s2624_s0 = inlined_call_operand.vmem [shape: f32[2,12,256], index: 0, kind: input, shape index: {}]   ;;  %s2625_s1 = inlined_call_operand.vmem [shape: f32[98], index: 1, kind: input, shape index: {}]   ;;  %s2626_s2 = inlined_call_operand.hbm [shape: f32[2,1,16,16], index: 2, kind: output, shape index: {}]  }
   0x1   :  { %2792 = sst [smem:[#allocation97_spill]] %s2624_s0 }
   0x2   :  { %2793 = sst [smem:[#allocation98_spill]] %s2625_s1 }
   0x3   :  { %2794 = sst [smem:[#allocation99_spill]] %s2626_s2 }
   0x4   :  { %7 = vsyncpa [#allocation5], 0 }
   0x5   :  { %8 = vsyncpa [#allocation4], 0 }
   0x6   :  { %10 = vsyncpa [#allocation4 + $0x1], 0  ;;  %s1450_s9 = smov 0   ;;  %s1452_s10 = smov 0  }
   0x7   :  { %s1454_s11 = smov 0   ;;  %s1456_s12 = smov 0  }
   0x8 LB: > { %2795 = sst [smem:[#allocation9_spill]] %s1402_s9  ;;  %s1471_s13 = sadd.s32 4294967295, %s1414_s12   ;;  %s1414_s12 = sphi %s1456_s12, %s3160_s12   ;;  %s1410_s11 = sphi %s1454_s11, %s3163_s11   ;;  %s1406_s10 = sphi %s1452_s10, %s3162_s10   ;;  %s1402_s9 = sphi %s1450_s9, %s3161_s9  }
   0x9   : > { %2796 = sst [smem:[#allocation10_spill]] %s1406_s10  ;;  %s1134_s14 = sadd.s32 4294967294, %s1414_s12  }
   0xa   : > { %2797 = sst [smem:[#allocation11_spill]] %s1410_s11  ;;  %s1475_s15 = sadd.s32 1, %s1414_s12  }
   0xb   : > { %2798 = sst [smem:[#allocation12_spill]] %s1414_s12  ;;  %s70_s16 = sadd.s32 1, %s1410_s11 }
   0xc   : > { %2799 = sst [smem:[#allocation13_spill]] %s1471_s13  ;;  %s67_s17 = ssub.s32 %s1414_s12, %s1475_s15 }
   0xd   : > { %2800 = sst [smem:[#allocation14_spill]] %s1475_s15  ;;  %p80_p0 = scmp.ne.s32.totalorder %s1410_s11, %s1406_s10 }
   0xe   : > { %p68_p1 = scmp.eq.s32.totalorder %s67_s17, 0  ;;  %p81_p2 = scmp.eq.s32.totalorder %s1471_s13, 1 }
   0xf   : > { %p86_p3 = scmp.ne.s32.totalorder %s1406_s10, %s1402_s9  ;;  %p87_p4 = scmp.eq.s32.totalorder %s1134_s14, 1 }
  0x10   : > { %s1486_s18 = scalar_select %p68_p1, %s1410_s11, %s70_s16  }
  0x11   : > { %p1488_p5 = por %p81_p2, %p80_p0  ;;  %p1492_p6 = por %p87_p4, %p86_p3 }
  0x12   : > { %2801 = sst [smem:[#allocation15_spill]] %s1486_s18  ;;  %p1135_p7 = scmp.ge.s32.totalorder %s1414_s12, 1 }
  0x13   : > { %s2802_s19 = scalar_select %p1488_p5, 1, 0 }
  0x14   : > { %s2804_s20 = scalar_select %p1492_p6, 1, 0 }
  0x15   : > { %2803 = sst [smem:[#allocation16_spill]] %s2802_s19  ;;  %p94_p8 = scmp.lt.s32.totalorder %s1414_s12, 3 }
  0x16   : > { %2805 = sst [smem:[#allocation17_spill]] %s2804_s20  ;;  %p1274_p9 = scmp.eq.s32.totalorder %s1471_s13, 0 }
  0x17   : > { %p1499_p10 = pnand %p1135_p7, %p94_p8  ;;  %s2807_s1 = sld [smem:[#allocation98_spill]] }
  0x19   : > { %p1266_p11 = pneg %p1499_p10 }
  0x1b   : > { %p1267_p12 = pnand %p1274_p9, %p1266_p11 }
  0x1d   : > { %s107_s24 = sshll.u32 %s2807_s1, 4  ;;  %p1337_p0 = pneg %p1267_p12  ;;  %s108_s24 = int_to_ptr.vmem [resolvable:$true] %s107_s24 }
  0x1e   : > { %s1335_s25 = scalar_lea.vmem %s108_s24, 16  ;;  %p1343_p3 = scmp.lt.s32.totalorder %s108_s24, %s108_s24 }
  0x1f   : > { %p1336_p13 = scmp.ne.s32.totalorder %s108_s24, %s1335_s25  ;;  %p1344_p4 = scmp.lt.s32.totalorder %s1335_s25, %s1335_s25 }
  0x21   : > { %p1338_p1 = pnand %p1337_p0, %p1336_p13  ;;  %p1345_p7 = por %p1344_p4, %p1343_p3 }
  0x23   : > { %p1339_p2 = pneg %p1338_p1 }
  0x25   : > { %p1346_p8 = pnand %p1345_p7, %p1339_p2 }
  0x27   : > { %1349 = shalt.err (!%p1346_p8)
}
  0x28   : > { %s1416_s26 = smov [#allocation3]   ;;  %128 = sbr.rel (%p1499_p10) target bundleno = 525 (0x20d), region = 28 }
  0x29   : > { %1269 = dma.vmem_to_smem (!%p1267_p12), %s108_s24, 16, %s1416_s26, [#allocation5]  }
  0x2d   : > { %1393 = dma.done.wait (%p1274_p9), [#allocation5], 16  }
  0x2e   : > { %1395 = vsyncadd (%p1274_p9), [#allocation5], 4294967280 }
  0x2f   : > { %134 = sfence }
  0x30   : > { %p151_p11 = scmp.lt.s32.totalorder %s1471_s13, 1  ;;  %v1417_v0 = vmov 0.0   ;;  %s2808_s0 = sld [smem:[#allocation97_spill]]  ;;  %v209_v20 = vlaneseq  ;;  %vm216_vm0 = vcmask 147480   ;;  %vm1043_vm1 = vcmask 130048  }
  0x31   : > { %159 = vst [vmem:[#allocation2 + $0x18] sm:$0xff] %v1417_v0  ;;  %156 = vst [vmem:[#allocation2] sm:$0xff] %v1417_v0  ;;  %s1418_s4 = smov 115   ;;  %s1419_s5 = smov 3  }
  0x32   : > { %157 = vst [vmem:[#allocation2 + $0x8] sm:$0xff] %v1417_v0  ;;  %158 = vst [vmem:[#allocation2 + $0x10] sm:$0xff] %v1417_v0  ;;  %s152_s27 = scalar_select %p151_p11, %s1471_s13, 1  ;;  %v210_v27 = vshrl.u32 %v209_v20, 7 }
  0x33   : > { %160 = vst [vmem:[#allocation2 + $0x20] sm:$0xff] %v1417_v0  ;;  %161 = vst [vmem:[#allocation2 + $0x28] sm:$0xf] %v1417_v0  ;;  %s1420_s6 = smov 99   ;;  %s1421_s7 = smov 83  }
  0x34   : > { %s1258_s28 = sshll.u32 %s152_s27, 5  ;;  %v211_v34 = vsub.s32 0, %v210_v27  ;;  %s1422_s8 = smov 51   ;;  %v285_v41 = vsub.s32 1, %v210_v27 }
  0x35   : > { %s1423_s14 = smov 67   ;;  %s1424_s16 = smov 19  }
  0x36   : > { %s1521_s3 = scalar_lea.vmem %s2808_s0, %s1258_s28  ;;  %s1425_s17 = smov 35  }
  0x37   : > { %v162_v1 = vld [vmem:[%s1521_s3] ss:$8 sm:$0x3]  ;;  %v1143_v2 = vld [vmem:[%s1521_s3 + $0x1] ss:$8 sm:$0x3] }
  0x38   : > { %v166_v3 = vmax.f32 %v162_v1, %v1143_v2  ;;  %v1144_v4 = vld [vmem:[%s1521_s3 + $0x2] ss:$8 sm:$0x3]  ;;  %v165_v5 = vadd.f32 %v1143_v2, %v162_v1  ;;  %v1145_v6 = vld [vmem:[%s1521_s3 + $0x3] ss:$8 sm:$0x3] }
  0x39   : > { %v1146_v9 = vld [vmem:[%s1521_s3 + $0x4] ss:$8 sm:$0x3]  ;;  %v1147_v12 = vld [vmem:[%s1521_s3 + $0x5] ss:$8 sm:$0x3] }
  0x3a   : > { %v170_v7 = vmax.f32 %v166_v3, %v1144_v4  ;;  %v169_v8 = vadd.f32 %v1144_v4, %v165_v5  ;;  %v1148_v15 = vld [vmem:[%s1521_s3 + $0x6] ss:$8 sm:$0x3]  ;;  %v1149_v18 = vld [vmem:[%s1521_s3 + $0x7] ss:$8 sm:$0x3] }
  0x3b   : > { %v1150_v22 = vld [vmem:[%s1521_s3 + $0x10] ss:$8 sm:$0x3]  ;;  %v1151_v25 = vld [vmem:[%s1521_s3 + $0x11] ss:$8 sm:$0x3] }
  0x3c   : > { %v174_v10 = vmax.f32 %v170_v7, %v1145_v6  ;;  %v173_v11 = vadd.f32 %v1145_v6, %v169_v8  ;;  %v1152_v29 = vld [vmem:[%s1521_s3 + $0x12] ss:$8 sm:$0x3]  ;;  %v1153_v32 = vld [vmem:[%s1521_s3 + $0x13] ss:$8 sm:$0x3] }
  0x3d   : > { %s1561_s21 = sld [smem:[#allocation3 + $0x1]] }
  0x3e   : > { %v178_v13 = vmax.f32 %v174_v10, %v1146_v9  ;;  %v177_v14 = vadd.f32 %v1146_v9, %v173_v11  ;;  %s1565_s22 = sld [smem:[#allocation3 + $0x8]] }
  0x3f   : > { %s1567_s23 = sld [smem:[#allocation3 + $0x2]] }
  0x40   : > { %v182_v16 = vmax.f32 %v178_v13, %v1147_v12  ;;  %v181_v17 = vadd.f32 %v1147_v12, %v177_v14  ;;  %s1569_s24 = sld [smem:[#allocation3 + $0x9]] }
  0x41   : > { %s1571_s25 = sld [smem:[#allocation3 + $0xf]] }
  0x42   : > { %v186_v19 = vmax.f32 %v182_v16, %v1148_v15  ;;  %v185_v21 = vadd.f32 %v1148_v15, %v181_v17  ;;  %s1575_s26 = sld [smem:[#allocation3 + $0x16]] }
  0x43   : > { %2809 = sst [smem:[#allocation18_spill]] %s1561_s21  ;;  %v364_v46 = vstv %s1561_s21 }
  0x44   : > { %v190_v23 = vmax.f32 %v186_v19, %v1149_v18  ;;  %v189_v24 = vadd.f32 %v1149_v18, %v185_v21  ;;  %2810 = sst [smem:[#allocation19_spill]] %s1565_s22  ;;  %v408_v47 = vstv %s1565_s22 }
  0x45   : > { %2811 = sst [smem:[#allocation20_spill]] %s1567_s23  ;;  %v370_v48 = vstv %s1567_s23 }
  0x46   : > { %v194_v26 = vmax.f32 %v190_v23, %v1150_v22  ;;  %v193_v28 = vadd.f32 %v1150_v22, %v189_v24  ;;  %2812 = sst [smem:[#allocation21_spill]] %s1569_s24  ;;  %v414_v51 = vstv %s1569_s24 }
  0x47   : > { %2813 = sst [smem:[#allocation22_spill]] %s1571_s25  ;;  %v452_v49 = vstv %s1571_s25 }
  0x48   : > { %v198_v30 = vmax.f32 %v194_v26, %v1151_v25  ;;  %v197_v31 = vadd.f32 %v1151_v25, %v193_v28  ;;  %2814 = sst [smem:[#allocation23_spill]] %s1575_s26  ;;  %v496_v50 = vstv %s1575_s26 }
  0x49   : > { %s1577_s27 = sld [smem:[#allocation3 + $0x10]] }
  0x4a   : > { %v202_v33 = vmax.f32 %v198_v30, %v1152_v29  ;;  %v201_v35 = vadd.f32 %v1152_v29, %v197_v31  ;;  %s1579_s28 = sld [smem:[#allocation3 + $0x17]] }
  0x4b   : > { %s1581_s29 = sld [smem:[#allocation3 + $0x1d]] }
  0x4c   : > { %v206_v36 = vmax.f32 %v202_v33, %v1153_v32  ;;  %v205_v37 = vadd.f32 %v1153_v32, %v201_v35  ;;  %s1585_s30 = sld [smem:[#allocation3 + $0x24]] }
  0x4d   : > { %s1587_s3 = sld [smem:[#allocation3 + $0x1e]] }
  0x4e   : > { %v222_v38 = vrot.slane %v206_v36, %v211_v34  ;;  %v207_v39 = vmul.f32 0.083333336, %v205_v37  ;;  %v294_v43 = vrot.slane %v206_v36, %v285_v41  ;;  %s1601_s0 = sld [smem:[#allocation3 + $0x18]] }
  0x4f   : > { %2815 = sst [smem:[#allocation24_spill]] %s1577_s27  ;;  %v458_v52 = vstv %s1577_s27 }
  0x50   : > { %231 = vrot.lane.b32.xlu1 %v222_v38, %s1418_s4  ;;  %223 = vrot.lane.b32.xlu0 %v222_v38, %s1419_s5  ;;  %v212_v40 = vrot.slane %v207_v39, %v211_v34  ;;  %v286_v42 = vrot.slane %v207_v39, %v285_v41  ;;  %2816 = sst [smem:[#allocation25_spill]] %s1579_s28  ;;  %v502_v57 = vstv %s1579_s28 }
  0x51   : > { %2817 = sst [smem:[#allocation26_spill]] %s1581_s29  ;;  %v540_v55 = vstv %s1581_s29 }
  0x52   : > { %2818 = sst [smem:[#allocation27_spill]] %s1585_s30  ;;  %v584_v56 = vstv %s1585_s30 }
  0x53   : > { %2819 = sst [smem:[#allocation28_spill]] %s1587_s3  ;;  %v546_v58 = vstv %s1587_s3 }
  0x54   : > { %235 = vrot.lane.b32.xlu1 %v212_v40, %s1420_s6  ;;  %213 = vrot.lane.b32.xlu0 %v212_v40, %s1419_s5  ;;  %2826 = sst [smem:[#allocation35_spill]] %s1601_s0  ;;  %v508_v1 = vstv %s1601_s0 }
  0x55   : > { %s1607_s1 = sld [smem:[#allocation3 + $0x2d]] }
  0x56   : > { %s1609_s18 = sld [smem:[#allocation3 + $0x4]] }
  0x57   : > { %s1611_s11 = sld [smem:[#allocation3 + $0xb]] }
  0x58   : > { %243 = vrot.lane.b32.xlu1 %v212_v40, %s1421_s7  ;;  %227 = vrot.lane.b32.xlu0 %v212_v40, %s1418_s4  ;;  %s1613_s15 = sld [smem:[#allocation3 + $0x12]] }
  0x59   : > { %s1615_s20 = sld [smem:[#allocation3 + $0x19]] }
  0x5a   : > { %s1617_s9 = sld [smem:[#allocation3 + $0x20]] }
  0x5b   : > { %2829 = sst [smem:[#allocation38_spill]] %s1607_s1 }
  0x5c   : > { %259 = vrot.lane.b32.xlu1 %v212_v40, %s1422_s8  ;;  %251 = vrot.lane.b32.xlu0 %v212_v40, %s1423_s14  ;;  %2830 = sst [smem:[#allocation39_spill]] %s1609_s18 }
  0x5d   : > { %2831 = sst [smem:[#allocation40_spill]] %s1611_s11 }
  0x5e   : > { %2832 = sst [smem:[#allocation41_spill]] %s1613_s15 }
  0x5f   : > { %2833 = sst [smem:[#allocation42_spill]] %s1615_s20 }
  0x60   : > { %275 = vrot.lane.b32.xlu1 %v212_v40, %s1424_s16  ;;  %267 = vrot.lane.b32.xlu0 %v212_v40, %s1425_s17  ;;  %2834 = sst [smem:[#allocation43_spill]] %s1617_s9 }
  0x61   : > { %s1619_s12 = sld [smem:[#allocation3 + $0x27]] }
  0x62   : > { %s1621_s2 = sld [smem:[#allocation3 + $0x2e]] }
  0x63   : > { %s1623_s19 = sld [smem:[#allocation3 + $0x32]] }
  0x64   : > { %299 = vrot.lane.b32.xlu1 %v286_v42, %s1418_s4  ;;  %287 = vrot.lane.b32.xlu0 %v286_v42, %s1419_s5  ;;  %s1625_s13 = sld [smem:[#allocation3 + $0x39]] }
  0x65   : > { %s1627_s10 = sld [smem:[#allocation3 + $0x33]] }
  0x66   : > { %s1629_s1 = sld [smem:[#allocation3 + $0x3a]] }
  0x67   : > { %2835 = sst [smem:[#allocation44_spill]] %s1619_s12 }
  0x68   : > { %315 = vrot.lane.b32.xlu1 %v286_v42, %s1421_s7  ;;  %307 = vrot.lane.b32.xlu0 %v286_v42, %s1420_s6  ;;  %2836 = sst [smem:[#allocation45_spill]] %s1621_s2 }
  0x69   : > { %2837 = sst [smem:[#allocation46_spill]] %s1623_s19 }
  0x6a   : > { %2838 = sst [smem:[#allocation47_spill]] %s1625_s13 }
  0x6b   : > { %2839 = sst [smem:[#allocation48_spill]] %s1627_s10 }
  0x6c   : > { %331 = vrot.lane.b32.xlu1 %v286_v42, %s1422_s8  ;;  %323 = vrot.lane.b32.xlu0 %v286_v42, %s1423_s14  ;;  %2840 = sst [smem:[#allocation49_spill]] %s1629_s1 }
  0x6d   : > { %s1631_s18 = sld [smem:[#allocation3 + $0x40]] }
  0x6e   : > { %s1633_s11 = sld [smem:[#allocation3 + $0x47]] }
  0x6f   : > { %s1635_s15 = sld [smem:[#allocation3 + $0x41]] }
  0x70   : > { %347 = vrot.lane.b32.xlu1 %v286_v42, %s1424_s16  ;;  %339 = vrot.lane.b32.xlu0 %v286_v42, %s1425_s17  ;;  %s1637_s20 = sld [smem:[#allocation3 + $0x48]] }
  0x71   : > { %s1639_s9 = sld [smem:[#allocation3 + $0x4e]] }
  0x72   : > { %s1641_s12 = sld [smem:[#allocation3 + $0x55]] }
  0x73   : > { %2841 = sst [smem:[#allocation50_spill]] %s1631_s18 }
  0x74   : > { %247 = vrot.lane.b32.xlu1 %v222_v38, %s1421_s7  ;;  %239 = vrot.lane.b32.xlu0 %v222_v38, %s1420_s6  ;;  %2842 = sst [smem:[#allocation51_spill]] %s1633_s11 }
  0x75   : > { %2843 = sst [smem:[#allocation52_spill]] %s1635_s15 }
  0x76   : > { %2844 = sst [smem:[#allocation53_spill]] %s1637_s20 }
  0x77   : > { %2845 = sst [smem:[#allocation54_spill]] %s1639_s9 }
  0x78   : > { %263 = vrot.lane.b32.xlu1 %v222_v38, %s1422_s8  ;;  %255 = vrot.lane.b32.xlu0 %v222_v38, %s1423_s14  ;;  %2846 = sst [smem:[#allocation55_spill]] %s1641_s12 }
  0x79   : > { %s1643_s2 = sld [smem:[#allocation3 + $0x4f]] }
  0x7a   : > { %s1645_s19 = sld [smem:[#allocation3 + $0x56]] }
  0x7b   : > { %s1647_s13 = sld [smem:[#allocation3 + $0x5c]] }
  0x7c   : > { %279 = vrot.lane.b32.xlu1 %v222_v38, %s1424_s16  ;;  %271 = vrot.lane.b32.xlu0 %v222_v38, %s1425_s17  ;;  %s1649_s10 = sld [smem:[#allocation3 + $0x5d]] }
  0x7d   : > { %s1651_s1 = sld [smem:[#allocation3 + $0x34]] }
  0x7e   : > { %s1653_s18 = sld [smem:[#allocation3 + $0x3b]] }
  0x7f   : > { %2847 = sst [smem:[#allocation56_spill]] %s1643_s2 }
  0x80   : > { %303 = vrot.lane.b32.xlu1 %v294_v43, %s1418_s4  ;;  %295 = vrot.lane.b32.xlu0 %v294_v43, %s1419_s5  ;;  %s1589_s4 = sld [smem:[#allocation3 + $0x25]] }
  0x81   : > { %s1591_s5 = sld [smem:[#allocation3 + $0x2b]] }
  0x82   : > { %2848 = sst [smem:[#allocation57_spill]] %s1645_s19 }
  0x83   : > { %2849 = sst [smem:[#allocation58_spill]] %s1647_s13 }
  0x84   : > { %319 = vrot.lane.b32.xlu1 %v294_v43, %s1421_s7  ;;  %311 = vrot.lane.b32.xlu0 %v294_v43, %s1420_s6  ;;  %s1593_s6 = sld [smem:[#allocation3 + $0x2c]] }
  0x85   : > { %s1595_s7 = sld [smem:[#allocation3 + $0x3]] }
  0x86   : > { %2820 = sst [smem:[#allocation29_spill]] %s1589_s4  ;;  %v590_v60 = vstv %s1589_s4 }
  0x87   : > { %2821 = sst [smem:[#allocation30_spill]] %s1591_s5  ;;  %v628_v59 = vstv %s1591_s5 }
  0x88   : > { %335 = vrot.lane.b32.xlu1 %v294_v43, %s1422_s8  ;;  %327 = vrot.lane.b32.xlu0 %v294_v43, %s1423_s14  ;;  %s1597_s8 = sld [smem:[#allocation3 + $0xa]] }
  0x89   : > { %s1599_s14 = sld [smem:[#allocation3 + $0x11]] }
  0x8a   : > { %2822 = sst [smem:[#allocation31_spill]] %s1593_s6  ;;  %v634_v61 = vstv %s1593_s6 }
  0x8b   : > { %2823 = sst [smem:[#allocation32_spill]] %s1595_s7  ;;  %v376_v62 = vstv %s1595_s7 }
  0x8c   : > { %351 = vrot.lane.b32.xlu1 %v294_v43, %s1424_s16  ;;  %343 = vrot.lane.b32.xlu0 %v294_v43, %s1425_s17  ;;  %s1603_s16 = sld [smem:[#allocation3 + $0x1f]] }
  0x8d   : > { %s1605_s17 = sld [smem:[#allocation3 + $0x26]] }
  0x8e   : > { %2824 = sst [smem:[#allocation33_spill]] %s1597_s8  ;;  %v420_v63 = vstv %s1597_s8 }
  0x8f   : > { %2825 = sst [smem:[#allocation34_spill]] %s1599_s14  ;;  %v464_v0 = vstv %s1599_s14 }
  0x90   : > { %2850 = sst [smem:[#allocation59_spill]] %s1649_s10 }
  0x91   : > { %2851 = sst [smem:[#allocation60_spill]] %s1651_s1 }
  0x92   : > { %2827 = sst [smem:[#allocation36_spill]] %s1603_s16  ;;  %v552_v2 = vstv %s1603_s16 }
  0x93   : > { %2828 = sst [smem:[#allocation37_spill]] %s1605_s17  ;;  %v596_v3 = vstv %s1605_s17 }
  0x94   : > { %2852 = sst [smem:[#allocation61_spill]] %s1653_s18 }
  0x95   : > { %s1655_s11 = sld [smem:[#allocation3 + $0x42]] }
  0x96   : > { %s1657_s15 = sld [smem:[#allocation3 + $0x49]] }
  0x97   : > { %s1659_s20 = sld [smem:[#allocation3 + $0x50]] }
  0x98   : > { %s1661_s9 = sld [smem:[#allocation3 + $0x57]] }
  0x99   : > { %s1663_s12 = sld [smem:[#allocation3 + $0x5e]] }
  0x9a   : > { %s1665_s2 = sld [smem:[#allocation3 + $0x35]] }
  0x9b   : > { %2853 = sst [smem:[#allocation62_spill]] %s1655_s11 }
  0x9c   : > { %2854 = sst [smem:[#allocation63_spill]] %s1657_s15 }
  0x9d   : > { %2855 = sst [smem:[#allocation64_spill]] %s1659_s20 }
  0x9e   : > { %2856 = sst [smem:[#allocation65_spill]] %s1661_s9 }
  0x9f   : > { %2857 = sst [smem:[#allocation66_spill]] %s1663_s12 }
  0xa0   : > { %2858 = sst [smem:[#allocation67_spill]] %s1665_s2 }
  0xa1   : > { %s1667_s19 = sld [smem:[#allocation3 + $0x3c]] }
  0xa2   : > { %s1669_s13 = sld [smem:[#allocation3 + $0x43]] }
  0xa3   : > { %s1671_s10 = sld [smem:[#allocation3 + $0x4a]] }
  0xa4   : > { %s1673_s1 = sld [smem:[#allocation3 + $0x51]] }
  0xa5   : > { %s1675_s18 = sld [smem:[#allocation3 + $0x58]] }
  0xa6   : > { %s1677_s15 = sld [smem:[#allocation3 + $0x5f]] }
  0xa7   : > { %2859 = sst [smem:[#allocation68_spill]] %s1667_s19 }
  0xa8   : > { %2860 = sst [smem:[#allocation69_spill]] %s1669_s13 }
  0xa9   : > { %2861 = sst [smem:[#allocation70_spill]] %s1671_s10 }
  0xaa   : > { %2862 = sst [smem:[#allocation71_spill]] %s1673_s1 }
  0xab   : > { %2863 = sst [smem:[#allocation72_spill]] %s1675_s18 }
  0xac   : > { %2864 = sst [smem:[#allocation73_spill]] %s1677_s15 }
  0xad   : > { %s1679_s20 = sld [smem:[#allocation3 + $0x5]] }
  0xae   : > { %s1681_s12 = sld [smem:[#allocation3 + $0xc]] }
  0xaf   : > { %s1683_s2 = sld [smem:[#allocation3 + $0x13]] }
  0xb0   : > { %s1685_s19 = sld [smem:[#allocation3 + $0x1a]] }
  0xb1   : > { %s1687_s10 = sld [smem:[#allocation3 + $0x21]] }
  0xb2   : > { %s1689_s18 = sld [smem:[#allocation3 + $0x28]] }
  0xb3   : > { %2865 = sst [smem:[#allocation74_spill]] %s1679_s20 }
  0xb4   : > { %2866 = sst [smem:[#allocation75_spill]] %s1681_s12 }
  0xb5   : > { %2867 = sst [smem:[#allocation76_spill]] %s1683_s2 }
  0xb6   : > { %2868 = sst [smem:[#allocation77_spill]] %s1685_s19 }
  0xb7   : > { %2869 = sst [smem:[#allocation78_spill]] %s1687_s10 }
  0xb8   : > { %2870 = sst [smem:[#allocation79_spill]] %s1689_s18 }
  0xb9   : > { %s1691_s15 = sld [smem:[#allocation3 + $0x2f]] }
  0xba   : > { %s1693_s20 = sld [smem:[#allocation3 + $0x36]] }
  0xbb   : > { %s1697_s10 = sld [smem:[#allocation3 + $0x3d]] }
  0xbc   : > { %s1702_s18 = sld [smem:[#allocation3 + $0x44]] }
  0xbd   : > { %s2876_s23 = sld [smem:[#allocation38_spill]] }
  0xbe   : > { %s2877_s25 = sld [smem:[#allocation39_spill]] }
  0xbf   : > { %2871 = sst [smem:[#allocation80_spill]] %s1691_s15  ;;  %v2769_v42 = vstv %s1691_s15 }
  0xc0   : > { %2872 = sst [smem:[#allocation81_spill]] %s1693_s20 }
  0xc1   : > { %2873 = sst [smem:[#allocation82_spill]] %s1697_s10 }
  0xc2   : > { %v232_v44 = vpop.permute.xlu1 %231  ;;  %v224_v45 = vpop.permute.xlu0 %223  ;;  %2874 = sst [smem:[#allocation83_spill]] %s1702_s18 }
  0xc3   : > { %234 = vst.msk [vmem:[#allocation2 + $0x1a] sm:$0x1] %vm216_vm0, %v232_v44  ;;  %226 = vst.msk [vmem:[#allocation2 + $0x19] sm:$0x1] %vm216_vm0, %v224_v45  ;;  %s1708_s20 = sld [smem:[#allocation3 + $0x4b]]  ;;  %v640_v4 = vstv %s2876_s23 }
  0xc4   : > { %s1714_s22 = sld [smem:[#allocation3 + $0x52]]  ;;  %v2733_v5 = vstv %s2877_s25 }
  0xc5   : > { %s2879_s26 = sld [smem:[#allocation40_spill]] }
  0xc6   : > { %v236_v53 = vpop.permute.xlu1 %235  ;;  %v214_v54 = vpop.permute.xlu0 %213  ;;  %s2880_s27 = sld [smem:[#allocation41_spill]] }
  0xc7   : > { %238 = vst.msk [vmem:[#allocation2 + $0x5] sm:$0x1] %vm216_vm0, %v236_v53  ;;  %217 = vst.msk [vmem:[#allocation2 + $0x3] sm:$0x1] %vm216_vm0, %v214_v54  ;;  %s2881_s24 = sld [smem:[#allocation42_spill]]  ;;  %v2743_v54 = vstv %s1681_s12 }
  0xc8   : > { %s2882_s29 = sld [smem:[#allocation43_spill]] }
  0xc9   : > { %2875 = sst [smem:[#allocation84_spill]] %s1708_s20 }
  0xca   : > { %2878 = sst [smem:[#allocation85_spill]] %s1714_s22  ;;  %v244_v7 = vpop.permute.xlu1 %243  ;;  %v228_v8 = vpop.permute.xlu0 %227 }
  0xcb   : > { %s1722_s30 = sld [smem:[#allocation3 + $0x59]]  ;;  %v2734_v6 = vstv %s2879_s26  ;;  %246 = vst.msk [vmem:[#allocation2 + $0x6] sm:$0x1] %vm216_vm0, %v244_v7  ;;  %230 = vst.msk [vmem:[#allocation2 + $0x4] sm:$0x1] %vm216_vm0, %v228_v8  ;;  %v2751_v7 = vstv %s1683_s2  ;;  %v2760_v8 = vstv %s1685_s19 }
  0xcc   : > { %s2884_s28 = sld [smem:[#allocation44_spill]]  ;;  %v2747_v9 = vstv %s2880_s27 }
  0xcd   : > { %s2885_s3 = sld [smem:[#allocation46_spill]]  ;;  %v2754_v10 = vstv %s2881_s24 }
  0xce   : > { %s1728_s21 = sld [smem:[#allocation3 + $0x60]]  ;;  %v2755_v11 = vstv %s2882_s29  ;;  %v260_v25 = vpop.permute.xlu1 %259  ;;  %v252_v26 = vpop.permute.xlu0 %251 }
  0xcf   : > { %s2888_s20 = sld [smem:[#allocation48_spill]]  ;;  %262 = vst.msk [vmem:[#allocation2 + $0x8] sm:$0x1] %vm216_vm0, %v260_v25  ;;  %254 = vst.msk [vmem:[#allocation2 + $0x7] sm:$0x1] %vm216_vm0, %v252_v26 }
  0xd0   : > { %s2889_s5 = sld [smem:[#allocation45_spill]] }
  0xd1   : > { %2883 = sst [smem:[#allocation86_spill]] %s1722_s30 }
  0xd2   : > { %s1734_s4 = sld [smem:[#allocation3 + $0x6]]  ;;  %v2782_v12 = vstv %s2884_s28  ;;  %v276_v43 = vpop.permute.xlu1 %275  ;;  %v268_v44 = vpop.permute.xlu0 %267 }
  0xd3   : > { %s1740_s8 = sld [smem:[#allocation3 + $0xd]]  ;;  %v672_v13 = vstv %s2885_s3  ;;  %278 = vst.msk [vmem:[#allocation2 + $0xa] sm:$0x1] %vm216_vm0, %v276_v43  ;;  %270 = vst.msk [vmem:[#allocation2 + $0x9] sm:$0x1] %vm216_vm0, %v268_v44 }
  0xd4   : > { %2886 = sst [smem:[#allocation87_spill]] %s1728_s21 }
  0xd5   : > { %v2787_v15 = vstv %s2888_s20  ;;  %s1748_s24 = sld [smem:[#allocation3 + $0x14]] }
  0xd6   : > { %v2781_v16 = vstv %s2889_s5  ;;  %s2904_s29 = sld [smem:[#allocation60_spill]]  ;;  %v1808_v44 = vld [vmem:[#allocation2] sm:$0xff]  ;;  %v300_v22 = vpop.permute.xlu1 %299  ;;  %v288_v45 = vpop.permute.xlu0 %287 }
  0xd7   : > { %s1760_s20 = sld [smem:[#allocation3 + $0x22]]  ;;  %v1810_v28 = vld [vmem:[#allocation2 + $0x1] sm:$0xff]  ;;  %302 = vst.msk [vmem:[#allocation2 + $0xc] sm:$0x1] %vm216_vm0, %v300_v22  ;;  %290 = vst.msk [vmem:[#allocation2 + $0xb] sm:$0x1] %vm216_vm0, %v288_v45  ;;  %v365_v34 = vmul.f32 %v364_v46, %v1808_v44  ;;  %v371_v21 = vmul.f32 %v370_v48, %v1808_v44  ;;  %v377_v23 = vmul.f32 %v376_v62, %v1808_v44 }
  0xd8   : > { %2891 = sst [smem:[#allocation88_spill]] %s1734_s4  ;;  %v409_v24 = vmul.f32 %v408_v47, %v1810_v28  ;;  %v415_v33 = vmul.f32 %v414_v51, %v1810_v28  ;;  %v421_v22 = vmul.f32 %v420_v63, %v1810_v28  ;;  %v383_v45 = vmul.f32 %v2733_v5, %v1808_v44 }
  0xd9   : > { %2898 = sst [smem:[#allocation89_spill]] %s1740_s8  ;;  %v427_v39 = vmul.f32 %v2734_v6, %v1810_v28  ;;  %v433_v20 = vmul.f32 %v2743_v54, %v1810_v28 }
  0xda   : > { %s1754_s8 = sld [smem:[#allocation3 + $0x1b]]  ;;  %v1854_v36 = vld [vmem:[#allocation2 + $0x2] sm:$0xff]  ;;  %v316_v5 = vpop.permute.xlu1 %315  ;;  %v308_v38 = vpop.permute.xlu0 %307  ;;  %v411_v6 = vadd.f32 %v409_v24, %v365_v34  ;;  %v417_v31 = vadd.f32 %v415_v33, %v371_v21  ;;  %v423_v24 = vadd.f32 %v421_v22, %v377_v23 }
  0xdb   : > { %2903 = sst [smem:[#allocation90_spill]] %s1748_s24  ;;  %v2767_v29 = vstv %s1748_s24  ;;  %v1856_v17 = vld [vmem:[#allocation2 + $0x3] sm:$0xff]  ;;  %318 = vst.msk [vmem:[#allocation2 + $0xe] sm:$0x1] %vm216_vm0, %v316_v5  ;;  %310 = vst.msk [vmem:[#allocation2 + $0xd] sm:$0x1] %vm216_vm0, %v308_v38  ;;  %v453_v32 = vmul.f32 %v452_v49, %v1854_v36  ;;  %v459_v21 = vmul.f32 %v458_v52, %v1854_v36  ;;  %v429_v33 = vadd.f32 %v427_v39, %v383_v45 }
  0xdc   : > { %v2786_v30 = vstv %s2904_s29  ;;  %s1766_s16 = sld [smem:[#allocation3 + $0x29]]  ;;  %v465_v34 = vmul.f32 %v464_v0, %v1854_v36  ;;  %v471_v5 = vmul.f32 %v2747_v9, %v1854_v36  ;;  %v497_v23 = vmul.f32 %v496_v50, %v1856_v17 }
  0xdd   : > { %2909 = sst [smem:[#allocation92_spill]] %s1760_s20  ;;  %v2778_v40 = vstv %s1760_s20  ;;  %v461_v39 = vadd.f32 %v459_v21, %v417_v31  ;;  %v503_v22 = vmul.f32 %v502_v57, %v1856_v17  ;;  %v477_v31 = vmul.f32 %v2751_v7, %v1854_v36 }
  0xde   : > { %s2917_s17 = sld [smem:[#allocation74_spill]]  ;;  %v1894_v45 = vld [vmem:[#allocation2 + $0x4] sm:$0xff]  ;;  %v332_v9 = vpop.permute.xlu1 %331  ;;  %v324_v14 = vpop.permute.xlu0 %323 }
  0xdf   : > { %s1774_s26 = sld [smem:[#allocation3 + $0x30]]  ;;  %334 = vst.msk [vmem:[#allocation2 + $0x10] sm:$0x1] %vm216_vm0, %v332_v9  ;;  %326 = vst.msk [vmem:[#allocation2 + $0xf] sm:$0x1] %vm216_vm0, %v324_v14  ;;  %v541_v21 = vmul.f32 %v540_v55, %v1894_v45  ;;  %v505_v37 = vadd.f32 %v503_v22, %v461_v39  ;;  %v553_v9 = vmul.f32 %v552_v2, %v1894_v45  ;;  %v1916_v7 = vld [vmem:[#allocation2 + $0x5] sm:$0xff] }
  0xe0   : > { %2906 = sst [smem:[#allocation91_spill]] %s1754_s8  ;;  %v2770_v27 = vstv %s1754_s8 }
  0xe1   : > { %s2919_s27 = sld [smem:[#allocation78_spill]] }
  0xe2   : > { %2914 = sst [smem:[#allocation93_spill]] %s1766_s16  ;;  %v2774_v18 = vstv %s1766_s16 }
  0xe3   : > { %s1780_s25 = sld [smem:[#allocation3 + $0x37]] }
  0xe4   : > { %s2921_s6 = sld [smem:[#allocation79_spill]]  ;;  %v2746_v53 = vstv %s2917_s17 }
  0xe5   : > { %2918 = sst [smem:[#allocation94_spill]] %s1774_s26  ;;  %v2773_v41 = vstv %s1774_s26  ;;  %v389_v19 = vmul.f32 %v2746_v53, %v1808_v44  ;;  %v455_v53 = vadd.f32 %v453_v32, %v411_v6  ;;  %v473_v6 = vadd.f32 %v471_v5, %v429_v33 }
  0xe6   : > { %s1786_s22 = sld [smem:[#allocation3 + $0x3e]]  ;;  %v547_v33 = vmul.f32 %v546_v58, %v1894_v45 }
  0xe7   : > { %s2927_s7 = sld [smem:[#allocation88_spill]]  ;;  %v2766_v25 = vstv %s2919_s27  ;;  %v499_v32 = vadd.f32 %v497_v23, %v455_v53  ;;  %v559_v53 = vmul.f32 %v2755_v11, %v1894_v45  ;;  %v1950_v11 = vld [vmem:[#allocation2 + $0x9] sm:$0xff] }
  0xe8   : > { %s2928_s0 = sld [smem:[#allocation89_spill]] }
  0xe9   : > { %2920 = sst [smem:[#allocation95_spill]] %s1780_s25 }
  0xea   : > { %v2768_v26 = vstv %s2921_s6  ;;  %s1806_s28 = sld [smem:[#allocation3 + $0x45]] }
  0xeb   : > { %s1816_s21 = sld [smem:[#allocation3 + $0x4c]] }
  0xec   : > { %2923 = sst [smem:[#allocation96_spill]] %s1786_s22 }
  0xed   : > { %v2748_v43 = vstv %s2927_s7  ;;  %s1832_s9 = sld [smem:[#allocation3 + $0x53]] }
  0xee   : > { %v2750_v35 = vstv %s2928_s0  ;;  %s1846_s3 = sld [smem:[#allocation3 + $0x5a]]  ;;  %v395_v38 = vmul.f32 %v2748_v43, %v1808_v44  ;;  %v467_v43 = vadd.f32 %v465_v34, %v423_v24  ;;  %v515_v24 = vmul.f32 %v2754_v10, %v1856_v17 }
  0xef   : > { %s1852_s29 = sld [smem:[#allocation3 + $0x61]]  ;;  %v439_v54 = vmul.f32 %v2750_v35, %v1810_v28  ;;  %v509_v35 = vmul.f32 %v508_v1, %v1856_v17  ;;  %v435_v34 = vadd.f32 %v433_v20, %v389_v19  ;;  %v348_v20 = vpop.permute.xlu1 %347  ;;  %v565_v19 = vmul.f32 %v2766_v25, %v1894_v45 }
  0xf0   : > { %2933 = sst [smem:[#allocation18_spill]] %s1806_s28  ;;  %v517_v14 = vadd.f32 %v515_v24, %v473_v6  ;;  %v790_v23 = vstv %s1806_s28  ;;  %350 = vst.msk [vmem:[#allocation2 + $0x12] sm:$0x1] %vm216_vm0, %v348_v20  ;;  %v1931_v6 = vld [vmem:[#allocation2 + $0x6] sm:$0xff]  ;;  %v521_v24 = vmul.f32 %v2760_v8, %v1856_v17  ;;  %v591_v20 = vmul.f32 %v590_v60, %v1916_v7 }
  0xf1   : > { %2938 = sst [smem:[#allocation19_spill]] %s1816_s21  ;;  %v511_v5 = vadd.f32 %v509_v35, %v467_v43  ;;  %v340_v35 = vpop.permute.xlu0 %339  ;;  %v543_v43 = vadd.f32 %v541_v21, %v499_v32  ;;  %v479_v39 = vadd.f32 %v477_v31, %v435_v34  ;;  %v585_v31 = vmul.f32 %v584_v56, %v1916_v7  ;;  %v1948_v32 = vld [vmem:[#allocation2 + $0x8] sm:$0xff]  ;;  %s2788_s21 = smov 127  }
  0xf2   : > { %s1864_s25 = sld [smem:[#allocation3]]  ;;  %342 = vst.msk [vmem:[#allocation2 + $0x11] sm:$0x1] %vm216_vm0, %v340_v35  ;;  %v549_v21 = vadd.f32 %v547_v33, %v505_v37  ;;  %v441_v10 = vadd.f32 %v439_v54, %v395_v38  ;;  %v561_v35 = vadd.f32 %v559_v53, %v517_v14  ;;  %v629_v38 = vmul.f32 %v628_v59, %v1931_v6 }
  0xf3   : > { %2939 = sst [smem:[#allocation20_spill]] %s1832_s9  ;;  %v878_v22 = vstv %s1832_s9  ;;  %v555_v34 = vadd.f32 %v553_v9, %v511_v5  ;;  %v523_v8 = vadd.f32 %v521_v24, %v479_v39  ;;  %v248_v37 = vpop.permute.xlu1 %247  ;;  %v587_v54 = vadd.f32 %v585_v31, %v543_v43 }
  0xf4   : > { %2940 = sst [smem:[#allocation21_spill]] %s1846_s3  ;;  %v597_v5 = vmul.f32 %v596_v3, %v1916_v7  ;;  %v603_v9 = vmul.f32 %v2782_v12, %v1916_v7  ;;  %250 = vst.msk [vmem:[#allocation2 + $0x1c] sm:$0x1] %vm216_vm0, %v248_v37  ;;  %v366_v53 = vmul.f32 %v364_v46, %v1948_v32  ;;  %v410_v43 = vmul.f32 %v408_v47, %v1950_v11 }
  0xf5   : > { %s1874_s17 = sld [smem:[#allocation3 + $0x7]]  ;;  %v240_v33 = vpop.permute.xlu0 %239  ;;  %v567_v14 = vadd.f32 %v565_v19, %v523_v8  ;;  %v483_v39 = vmul.f32 %v2767_v29, %v1854_v36  ;;  %v593_v24 = vadd.f32 %v591_v20, %v549_v21  ;;  %v635_v31 = vmul.f32 %v634_v61, %v1931_v6 }
  0xf6   : > { %s1923_s2 = sld [smem:[#allocation3 + $0xe]]  ;;  %242 = vst.msk [vmem:[#allocation2 + $0x1b] sm:$0x1] %vm216_vm0, %v240_v33  ;;  %v599_v37 = vadd.f32 %v597_v5, %v555_v34  ;;  %v641_v8 = vmul.f32 %v640_v4, %v1931_v6  ;;  %v605_v19 = vadd.f32 %v603_v9, %v561_v35  ;;  %v647_v46 = vmul.f32 %v2781_v16, %v1931_v6 }
  0xf7   : > { %s1927_s10 = sld [smem:[#allocation3 + $0x15]]  ;;  %v609_v47 = vmul.f32 %v2768_v26, %v1916_v7  ;;  %v485_v33 = vadd.f32 %v483_v39, %v441_v10  ;;  %v264_v21 = vpop.permute.xlu1 %263  ;;  %v653_v34 = vmul.f32 %v2769_v42, %v1931_v6  ;;  %v527_v35 = vmul.f32 %v2770_v27, %v1856_v17 }
  0xf8   : > { %2947 = sst [smem:[#allocation32_spill]] %s1864_s25  ;;  %266 = vst.msk [vmem:[#allocation2 + $0x1e] sm:$0x1] %vm216_vm0, %v264_v21  ;;  %v412_v39 = vadd.f32 %v410_v43, %v366_v53  ;;  %v571_v42 = vmul.f32 %v2778_v40, %v1894_v45  ;;  %v631_v27 = vadd.f32 %v629_v38, %v587_v54  ;;  %v372_v5 = vmul.f32 %v370_v48, %v1948_v32 }
  0xf9   : > { %s2961_s3 = sld [smem:[#allocation44_spill]]  ;;  %v1984_v25 = vld [vmem:[#allocation2 + $0xa] sm:$0xff]  ;;  %v256_v20 = vpop.permute.xlu0 %255  ;;  %v611_v10 = vadd.f32 %v609_v47, %v567_v14  ;;  %v529_v9 = vadd.f32 %v527_v35, %v485_v33  ;;  %v416_v21 = vmul.f32 %v414_v51, %v1950_v11  ;;  %v643_v43 = vadd.f32 %v641_v8, %v599_v37 }
  0xfa   : > { %s2964_s19 = sld [smem:[#allocation45_spill]]  ;;  %v1994_v29 = vld [vmem:[#allocation2 + $0xb] sm:$0xff]  ;;  %258 = vst.msk [vmem:[#allocation2 + $0x1d] sm:$0x1] %vm216_vm0, %v256_v20  ;;  %v454_v26 = vmul.f32 %v452_v49, %v1984_v25  ;;  %v637_v49 = vadd.f32 %v635_v31, %v593_v24  ;;  %v649_v47 = vadd.f32 %v647_v46, %v605_v19  ;;  %v460_v33 = vmul.f32 %v458_v52, %v1984_v25 }
  0xfb   : > { %2949 = sst [smem:[#allocation22_spill]] %s1874_s17  ;;  %v2010_v14 = vld [vmem:[#allocation2 + $0xc] sm:$0xff]  ;;  %v280_v54 = vpop.permute.xlu1 %279  ;;  %v498_v48 = vmul.f32 %v496_v50, %v1994_v29  ;;  %v378_v24 = vmul.f32 %v376_v62, %v1948_v32  ;;  %v2030_v31 = vadd.f32 %v653_v34, %v611_v10  ;;  %v573_v50 = vadd.f32 %v571_v42, %v529_v9 }
  0xfc   : > { %2956 = sst [smem:[#allocation24_spill]] %s1923_s2  ;;  %v2012_v53 = vld [vmem:[#allocation2 + $0xd] sm:$0xff]  ;;  %v456_v20 = vadd.f32 %v454_v26, %v412_v39  ;;  %v422_v26 = vmul.f32 %v420_v63, %v1950_v11  ;;  %282 = vst.msk [vmem:[#allocation2 + $0x20] sm:$0x1] %vm216_vm0, %v280_v54  ;;  %v615_v37 = vmul.f32 %v2774_v18, %v1916_v7  ;;  %v2038_v52 = vmul.f32 %v2773_v41, %v1931_v6 }
  0xfd   : > { %2958 = sst [smem:[#allocation23_spill]] %s1927_s10  ;;  %v272_v38 = vpop.permute.xlu0 %271  ;;  %v2017_v51 = vld [vmem:[#allocation2 + $0xe] sm:$0xff]  ;;  %v542_v63 = vmul.f32 %v540_v55, %v2010_v14  ;;  %v2046_v8 = vmul.f32 %v584_v56, %v2012_v53  ;;  %v418_v19 = vadd.f32 %v416_v21, %v372_v5  ;;  %v2056_v46 = vmul.f32 %v502_v57, %v1994_v29 }
  0xfe   : > { %274 = vst.msk [vmem:[#allocation2 + $0x1f] sm:$0x1] %vm216_vm0, %v272_v38  ;;  %v500_v62 = vadd.f32 %v498_v48, %v456_v20  ;;  %s2970_s4 = sld [smem:[#allocation48_spill]]  ;;  %v2051_v42 = vmul.f32 %v628_v59, %v2017_v51  ;;  %v2061_v34 = vmul.f32 %v546_v58, %v2010_v14  ;;  %v2066_v55 = vmul.f32 %v590_v60, %v2012_v53 }
  0xff   : > { %s2971_s12 = sld [smem:[#allocation60_spill]]  ;;  %v304_v56 = vpop.permute.xlu1 %303  ;;  %v2072_v57 = vadd.f32 %v460_v33, %v418_v19  ;;  %v2077_v58 = vmul.f32 %v634_v61, %v2017_v51  ;;  %v2079_v9 = vadd.f32 %v422_v26, %v378_v24  ;;  %v2084_v60 = vmul.f32 %v464_v0, %v1984_v25 }
 0x100   : > { %s2972_s5 = sld [smem:[#allocation67_spill]]  ;;  %306 = vst.msk [vmem:[#allocation2 + $0x22] sm:$0x1] %vm216_vm0, %v304_v56  ;;  %v2094_v61 = vadd.f32 %v615_v37, %v573_v50  ;;  %v2099_v21 = vmul.f32 %v508_v1, %v1994_v29  ;;  %v544_v38 = vadd.f32 %v542_v63, %v500_v62  ;;  %v2110_v48 = vmul.f32 %v552_v2, %v2010_v14 }
 0x101   : > { %v296_v35 = vpop.permute.xlu0 %295  ;;  %v2068_v59 = vld [vmem:[#allocation2 + $0x16] sm:$0xff]  ;;  %s2974_s22 = sld [smem:[#allocation47_spill]] }
 0x102   : > { %v2070_v5 = vld [vmem:[#allocation2 + $0x17] sm:$0xff]  ;;  %s2975_s11 = sld [smem:[#allocation49_spill]]  ;;  %298 = vst.msk [vmem:[#allocation2 + $0x21] sm:$0x1] %vm216_vm0, %v296_v35  ;;  %v673_v10 = vmul.f32 %v672_v13, %v2068_v59  ;;  %v679_v39 = vmul.f32 %v2787_v15, %v2068_v59  ;;  %v685_v0 = vmul.f32 %v2786_v30, %v2068_v59 }
 0x103   : > { %s2976_s25 = sld [smem:[#allocation61_spill]]  ;;  %v320_v19 = vpop.permute.xlu1 %319 }
 0x104   : > { %s2977_s7 = sld [smem:[#allocation68_spill]]  ;;  %v675_v33 = vadd.f32 %v673_v10, %v631_v27  ;;  %v681_v1 = vadd.f32 %v679_v39, %v637_v49  ;;  %v687_v2 = vadd.f32 %v685_v0, %v643_v43  ;;  %322 = vst.msk [vmem:[#allocation2 + $0x24] sm:$0x1] %vm216_vm0, %v320_v19 }
 0x105   : > { %s2979_s14 = sld [smem:[#allocation50_spill]]  ;;  %v312_v56 = vpop.permute.xlu0 %311  ;;  %v2118_v62 = vld [vmem:[#allocation2 + $0x18] sm:$0xff] }
 0x106   : > { %v2978_v20 = vstv %s2972_s5  ;;  %s2981_s26 = sld [smem:[#allocation81_spill]]  ;;  %v2120_v63 = vld [vmem:[#allocation2 + $0x19] sm:$0xff]  ;;  %314 = vst.msk [vmem:[#allocation2 + $0x23] sm:$0x1] %vm216_vm0, %v312_v56 }
 0x107   : > { %v691_v54 = vmul.f32 %v2978_v20, %v2068_v59  ;;  %v2980_v24 = vstv %s2974_s22  ;;  %s2983_s16 = sld [smem:[#allocation52_spill]]  ;;  %v336_v40 = vpop.permute.xlu1 %335 }
 0x108   : > { %v717_v26 = vmul.f32 %v2980_v24, %v2070_v5  ;;  %v2982_v50 = vstv %s2975_s11  ;;  %s2984_s1 = sld [smem:[#allocation62_spill]]  ;;  %338 = vst.msk [vmem:[#allocation2 + $0x26] sm:$0x1] %vm216_vm0, %v336_v40  ;;  %v588_v40 = vadd.f32 %v2046_v8, %v544_v38 }
 0x109   : > { %v723_v37 = vmul.f32 %v2982_v50, %v2070_v5  ;;  %s2985_s13 = sld [smem:[#allocation82_spill]]  ;;  %v2987_v27 = vstv %s2976_s25  ;;  %v693_v10 = vadd.f32 %v691_v54, %v649_v47 }
 0x10a   : > { %s2986_s0 = sld [smem:[#allocation51_spill]]  ;;  %v729_v35 = vmul.f32 %v2987_v27, %v2070_v5  ;;  %v2989_v49 = vstv %s2977_s7  ;;  %v719_v20 = vadd.f32 %v717_v26, %v675_v33 }
 0x10b   : > { %s2988_s10 = sld [smem:[#allocation69_spill]]  ;;  %v735_v39 = vmul.f32 %v2989_v49, %v2070_v5  ;;  %v2990_v24 = vstv %s2979_s14  ;;  %v725_v41 = vadd.f32 %v723_v37, %v681_v1  ;;  %v352_v15 = vpop.permute.xlu1 %351 }
 0x10c   : > { %v761_v50 = vmul.f32 %v2990_v24, %v2118_v62  ;;  %s2991_s23 = sld [smem:[#allocation53_spill]]  ;;  %v2992_v43 = vstv %s2981_s26  ;;  %v731_v54 = vadd.f32 %v729_v35, %v687_v2  ;;  %v2151_v2 = vld [vmem:[#allocation2 + $0x1a] sm:$0xff]  ;;  %354 = vst.msk [vmem:[#allocation2 + $0x28] sm:$0x1] %vm216_vm0, %v352_v15 }
 0x10d   : > { %v697_v0 = vmul.f32 %v2992_v43, %v2068_v59  ;;  %v2993_v27 = vstv %s2983_s16  ;;  %s2994_s18 = sld [smem:[#allocation63_spill]]  ;;  %v737_v37 = vadd.f32 %v735_v39, %v693_v10  ;;  %v2153_v35 = vld [vmem:[#allocation2 + $0x1b] sm:$0xff] }
 0x10e   : > { %v767_v47 = vmul.f32 %v2993_v27, %v2118_v62  ;;  %v2995_v49 = vstv %s2984_s1  ;;  %s2997_s2 = sld [smem:[#allocation54_spill]]  ;;  %v763_v33 = vadd.f32 %v761_v50, %v719_v20  ;;  %v328_v27 = vpop.permute.xlu0 %327 }
 0x10f   : > { %v773_v18 = vmul.f32 %v2995_v49, %v2118_v62  ;;  %v2996_v19 = vstv %s2985_s13  ;;  %s2999_s20 = sld [smem:[#allocation56_spill]]  ;;  %330 = vst.msk [vmem:[#allocation2 + $0x25] sm:$0x1] %vm216_vm0, %v328_v27 }
 0x110   : > { %v741_v56 = vmul.f32 %v2996_v19, %v2070_v5  ;;  %v2998_v26 = vstv %s2986_s0  ;;  %s3001_s8 = sld [smem:[#allocation64_spill]]  ;;  %v769_v49 = vadd.f32 %v767_v47, %v725_v41  ;;  %v699_v47 = vadd.f32 %v697_v0, %v2030_v31  ;;  %v2180_v0 = vld [vmem:[#allocation2 + $0x1c] sm:$0xff] }
 0x111   : > { %v805_v1 = vmul.f32 %v2998_v26, %v2120_v63  ;;  %v3000_v24 = vstv %s2988_s10  ;;  %s3002_s26 = sld [smem:[#allocation55_spill]]  ;;  %v775_v50 = vadd.f32 %v773_v18, %v731_v54 }
 0x112   : > { %v779_v43 = vmul.f32 %v3000_v24, %v2118_v62  ;;  %v3003_v19 = vstv %s2991_s23  ;;  %s3004_s13 = sld [smem:[#allocation95_spill]]  ;;  %v344_v31 = vpop.permute.xlu0 %343 }
 0x113   : > { %v811_v20 = vmul.f32 %v3003_v19, %v2120_v63  ;;  %v3005_v26 = vstv %s2994_s18  ;;  %v807_v39 = vadd.f32 %v805_v1, %v763_v33  ;;  %s3007_s15 = sld [smem:[#allocation57_spill]]  ;;  %346 = vst.msk [vmem:[#allocation2 + $0x27] sm:$0x1] %vm216_vm0, %v344_v31  ;;  %v506_v31 = vadd.f32 %v2056_v46, %v2072_v57 }
 0x114   : > { %v817_v10 = vmul.f32 %v3005_v26, %v2120_v63  ;;  %v3006_v24 = vstv %s2997_s2  ;;  %s3009_s6 = sld [smem:[#allocation70_spill]]  ;;  %v661_v46 = vadd.f32 %v2038_v52, %v2094_v61 }
 0x115   : > { %v849_v16 = vmul.f32 %v3006_v24, %v2151_v2  ;;  %v3008_v12 = vstv %s2999_s20  ;;  %v813_v19 = vadd.f32 %v811_v20, %v769_v49  ;;  %s3011_s24 = sld [smem:[#allocation58_spill]]  ;;  %v781_v24 = vadd.f32 %v779_v43, %v737_v37 }
 0x116   : > { %v855_v41 = vmul.f32 %v3008_v12, %v2151_v2  ;;  %v819_v18 = vadd.f32 %v817_v10, %v775_v50  ;;  %v3010_v54 = vstv %s3001_s8  ;;  %s3012_s27 = sld [smem:[#allocation65_spill]] }
 0x117   : > { %v861_v26 = vmul.f32 %v3010_v54, %v2151_v2  ;;  %v851_v33 = vadd.f32 %v849_v16, %v807_v39  ;;  %v3013_v1 = vstv %s3002_s26  ;;  %s3015_s10 = sld [smem:[#allocation59_spill]] }
 0x118   : > { %v893_v27 = vmul.f32 %v3013_v1, %v2153_v35  ;;  %v3014_v30 = vstv %s3004_s13  ;;  %s3016_s7 = sld [smem:[#allocation71_spill]]  ;;  %v857_v49 = vadd.f32 %v855_v41, %v813_v19  ;;  %v743_v41 = vadd.f32 %v741_v56, %v699_v47 }
 0x119   : > { %v703_v12 = vmul.f32 %v3014_v30, %v2068_v59  ;;  %s3017_s8 = sld [smem:[#allocation83_spill]]  ;;  %v3018_v20 = vstv %s3007_s15  ;;  %v863_v16 = vadd.f32 %v861_v26, %v819_v18  ;;  %v2210_v56 = vmul.f32 %v596_v3, %v2012_v53 }
 0x11a   : > { %v899_v8 = vmul.f32 %v3018_v20, %v2153_v35  ;;  %v3019_v38 = vstv %s3009_s6  ;;  %s3020_s18 = sld [smem:[#allocation66_spill]]  ;;  %v895_v30 = vadd.f32 %v893_v27, %v851_v33 }
 0x11b   : > { %v823_v50 = vmul.f32 %v3019_v38, %v2120_v63  ;;  %s3021_s13 = sld [smem:[#allocation84_spill]]  ;;  %v3022_v37 = vstv %s3011_s24 }
 0x11c   : > { %v937_v43 = vmul.f32 %v3022_v37, %v2180_v0  ;;  %v3023_v10 = vstv %s3012_s27  ;;  %v901_v19 = vadd.f32 %v899_v8, %v857_v49  ;;  %s3025_s6 = sld [smem:[#allocation85_spill]]  ;;  %v632_v37 = vadd.f32 %v2051_v42, %v588_v40 }
 0x11d   : > { %v905_v39 = vmul.f32 %v3023_v10, %v2153_v35  ;;  %v3024_v18 = vstv %s3015_s10  ;;  %v825_v26 = vadd.f32 %v823_v50, %v781_v24  ;;  %s3028_s27 = sld [smem:[#allocation96_spill]]  ;;  %v2218_v50 = vld [vmem:[#allocation2 + $0x1e] sm:$0xff] }
 0x11e   : > { %v943_v54 = vmul.f32 %v3024_v18, %v2180_v0  ;;  %v3026_v1 = vstv %s3016_s7  ;;  %v939_v20 = vadd.f32 %v937_v43, %v895_v30  ;;  %v2220_v30 = vld [vmem:[#allocation2 + $0x1f] sm:$0xff]  ;;  %v674_v43 = vmul.f32 %v672_v13, %v2218_v50  ;;  %s3037_s30 = sld [smem:[#allocation19_spill]] }
 0x11f   : > { %v867_v15 = vmul.f32 %v3026_v1, %v2151_v2  ;;  %v3027_v33 = vstv %s3017_s8  ;;  %v907_v47 = vadd.f32 %v905_v39, %v863_v16  ;;  %s3031_s8 = sld [smem:[#allocation72_spill]]  ;;  %v705_v18 = vadd.f32 %v703_v12, %v661_v46  ;;  %v2244_v13 = vld [vmem:[#allocation2 + $0x20] sm:$0xff] }
 0x120   : > { %v785_v27 = vmul.f32 %v3027_v33, %v2118_v62  ;;  %v3029_v49 = vstv %s3020_s18  ;;  %973 = vrot.lane.b32.xlu0 %v939_v20, %s2788_s21  ;;  %v945_v10 = vadd.f32 %v943_v54, %v901_v19  ;;  %v676_v20 = vadd.f32 %v674_v43, %v632_v37  ;;  %v2246_v19 = vld [vmem:[#allocation2 + $0x21] sm:$0xff]  ;;  %s3038_s21 = sld [smem:[#allocation86_spill]] }
 0x121   : > { %v949_v24 = vmul.f32 %v3029_v49, %v2180_v0  ;;  %v3030_v8 = vstv %s3021_s13  ;;  %v869_v39 = vadd.f32 %v867_v15, %v825_v26  ;;  %s3033_s13 = sld [smem:[#allocation73_spill]]  ;;  %v468_v54 = vadd.f32 %v2084_v60, %v2079_v9 }
 0x122   : > { %v829_v38 = vmul.f32 %v3030_v8, %v2120_v63  ;;  %v787_v3 = vadd.f32 %v785_v27, %v743_v41  ;;  %v3032_v57 = vstv %s3025_s6  ;;  %v3035_v41 = vstv %s2974_s22  ;;  %s2790_s22 = smov 126   ;;  %s3040_s28 = sld [smem:[#allocation39_spill]] }
 0x123   : > { %v873_v16 = vmul.f32 %v3032_v57, %v2151_v2  ;;  %v3034_v1 = vstv %s3028_s27  ;;  %v718_v33 = vmul.f32 %v3035_v41, %v2220_v30  ;;  %v791_v27 = vmul.f32 %v790_v23, %v2118_v62  ;;  %s3041_s27 = sld [smem:[#allocation40_spill]]  ;;  %v2262_v57 = vld [vmem:[#allocation2 + $0x22] sm:$0xff] }
 0x124   : > { %v747_v52 = vmul.f32 %v3034_v1, %v2070_v5  ;;  %v831_v61 = vadd.f32 %v829_v38, %v787_v3  ;;  %v2253_v26 = vmul.f32 %v640_v4, %v2017_v51  ;;  %983 = vrot.lane.b32.xlu0 %v945_v10, %s2790_s22  ;;  %v951_v15 = vadd.f32 %v949_v24, %v907_v47  ;;  %s3046_s17 = sld [smem:[#allocation87_spill]] }
 0x125   : > { %v3036_v42 = vstv %s3031_s8  ;;  %v720_v38 = vadd.f32 %v718_v33, %v676_v20  ;;  %v3042_v46 = vstv %s2979_s14  ;;  %v3043_v37 = vstv %s3037_s30  ;;  %s2285_s14 = sld [smem:[#allocation3 + $0x1c]] }
 0x126   : > { %v911_v40 = vmul.f32 %v3036_v42, %v2153_v35  ;;  %v749_v12 = vadd.f32 %v747_v52, %v705_v18  ;;  %v762_v3 = vmul.f32 %v3042_v46, %v2244_v13  ;;  %v875_v60 = vadd.f32 %v873_v16, %v831_v61  ;;  %v2270_v18 = vld [vmem:[#allocation2 + $0x23] sm:$0xff]  ;;  %s3049_s22 = sld [smem:[#allocation21_spill]] }
 0x127   : > { %v3039_v49 = vstv %s3033_s13  ;;  %v835_v43 = vmul.f32 %v3043_v37, %v2120_v63  ;;  %v3044_v47 = vstv %s2986_s0  ;;  %v879_v1 = vmul.f32 %v878_v22, %v2151_v2  ;;  %s1428_s0 = smov 125   ;;  %s3051_s9 = sld [smem:[#allocation41_spill]] }
 0x128   : > { %v955_v8 = vmul.f32 %v3039_v49, %v2180_v0  ;;  %v913_v9 = vadd.f32 %v911_v40, %v869_v39  ;;  %v793_v4 = vadd.f32 %v791_v27, %v749_v12  ;;  %v764_v10 = vadd.f32 %v762_v3, %v720_v38  ;;  %993 = vrot.lane.b32.xlu0 %v951_v15, %s1428_s0  ;;  %v2291_v40 = vld [vmem:[#allocation2 + $0x24] sm:$0xff] }
 0x129   : > { %v806_v24 = vmul.f32 %v3044_v47, %v2246_v19  ;;  %v550_v39 = vadd.f32 %v2061_v34, %v506_v31  ;;  %v3045_v16 = vstv %s3038_s21  ;;  %v3047_v20 = vstv %s3040_s28  ;;  %s3059_s28 = sld [smem:[#allocation42_spill]] }
 0x12a   : > { %v917_v52 = vmul.f32 %v3045_v16, %v2153_v35  ;;  %v837_v61 = vadd.f32 %v835_v43, %v793_v4  ;;  %v384_v41 = vmul.f32 %v3047_v20, %v1948_v32  ;;  %v3048_v33 = vstv %s3041_s27  ;;  %s2297_s27 = sld [smem:[#allocation3 + $0x23]] }
 0x12b   : > { %v428_v27 = vmul.f32 %v3048_v33, %v1950_v11  ;;  %v808_v34 = vadd.f32 %v806_v24, %v764_v10  ;;  %v3050_v31 = vstv %s2997_s2  ;;  %v594_v12 = vadd.f32 %v2066_v55, %v550_v39  ;;  %s1429_s2 = smov 124  }
 0x12c   : > { %v850_v42 = vmul.f32 %v3050_v31, %v2262_v57  ;;  %v3052_v49 = vstv %s2970_s4  ;;  %v957_v46 = vadd.f32 %v955_v8, %v913_v9  ;;  %v919_v3 = vadd.f32 %v917_v52, %v875_v60  ;;  %s1430_s4 = smov 123  }
 0x12d   : > { %v680_v38 = vmul.f32 %v3052_v49, %v2218_v50  ;;  %v3053_v15 = vstv %s3046_s17  ;;  %v3054_v37 = vstv %s3002_s26  ;;  %v881_v47 = vadd.f32 %v879_v1, %v837_v61  ;;  %s3068_s26 = sld [smem:[#allocation75_spill]] }
 0x12e   : > { %v961_v4 = vmul.f32 %v3053_v15, %v2180_v0  ;;  %v894_v43 = vmul.f32 %v3054_v37, %v2270_v18  ;;  %v852_v10 = vadd.f32 %v850_v42, %v808_v34  ;;  %v638_v55 = vadd.f32 %v2077_v58, %v594_v12  ;;  %1003 = vrot.lane.b32.xlu0 %v957_v46, %s1429_s2 }
 0x12f   : > { %v512_v24 = vadd.f32 %v2099_v21, %v468_v54  ;;  %v3055_v39 = vstv %s3011_s24  ;;  %v3056_v8 = vstv %s3049_s22  ;;  %v3057_v60 = vstv %s2975_s11  ;;  %s2324_s24 = sld [smem:[#allocation3 + $0x2a]]  ;;  %s3067_s11 = smov 127  }
 0x130   : > { %v938_v16 = vmul.f32 %v3055_v39, %v2291_v40  ;;  %v923_v9 = vmul.f32 %v3056_v8, %v2153_v35  ;;  %v724_v52 = vmul.f32 %v3057_v60, %v2220_v30  ;;  %v3058_v20 = vstv %s3051_s9  ;;  %s3063_s9 = sld [smem:[#allocation43_spill]] }
 0x131   : > { %v472_v33 = vmul.f32 %v3058_v20, %v1984_v25  ;;  %v896_v58 = vadd.f32 %v894_v43, %v852_v10  ;;  %v682_v21 = vadd.f32 %v680_v38, %v638_v55  ;;  %v3060_v54 = vstv %s2983_s16  ;;  %s3069_s16 = sld [smem:[#allocation76_spill]] }
 0x132   : > { %v768_v1 = vmul.f32 %v3060_v54, %v2244_v13  ;;  %v556_v61 = vadd.f32 %v2110_v48, %v512_v24  ;;  %v963_v34 = vadd.f32 %v961_v4, %v919_v3  ;;  %v3061_v31 = vstv %s1852_s29 }
 0x133   : > { %v967_v42 = vmul.f32 %v3061_v31, %v2180_v0  ;;  %v3062_v12 = vstv %s2971_s12  ;;  %v430_v46 = vadd.f32 %v428_v27, %v384_v41  ;;  %v940_v15 = vadd.f32 %v938_v16, %v896_v58  ;;  %s3066_s12 = sld [smem:[#allocation74_spill]] }
 0x134   : > { %v686_v49 = vmul.f32 %v3062_v12, %v2218_v50  ;;  %v925_v38 = vadd.f32 %v923_v9, %v881_v47  ;;  %v726_v37 = vadd.f32 %v724_v52, %v682_v21  ;;  %v600_v48 = vadd.f32 %v2210_v56, %v556_v61  ;;  %1013 = vrot.lane.b32.xlu0 %v963_v34, %s1430_s4 }
 0x135   : > { %v3064_v43 = vstv %s2991_s23  ;;  %v474_v4 = vadd.f32 %v472_v33, %v430_v46  ;;  %v3065_v10 = vstv %s3059_s28  ;;  %v534_v24 = vstv %s2285_s14  ;;  %975 = vrot.lane.b32.xlu1 %v940_v15, %s3067_s11  ;;  %s3079_s23 = sld [smem:[#allocation64_spill]] }
 0x136   : > { %v812_v3 = vmul.f32 %v3064_v43, %v2246_v19  ;;  %v516_v55 = vmul.f32 %v3065_v10, %v1994_v29  ;;  %v770_v41 = vadd.f32 %v768_v1, %v726_v37  ;;  %v3070_v56 = vstv %s2999_s20  ;;  %s3078_s20 = sld [smem:[#allocation63_spill]] }
 0x137   : > { %v856_v27 = vmul.f32 %v3070_v56, %v2262_v57  ;;  %v644_v47 = vadd.f32 %v2253_v26, %v600_v48  ;;  %v578_v39 = vstv %s2297_s27  ;;  %v3071_v16 = vstv %s2976_s25  ;;  %s2368_s25 = sld [smem:[#allocation3 + $0x31]] }
 0x138   : > { %v730_v8 = vmul.f32 %v3071_v16, %v2220_v30  ;;  %v3072_v9 = vstv %s2984_s1  ;;  %v518_v52 = vadd.f32 %v516_v55, %v474_v4  ;;  %v3073_v20 = vstv %s3063_s9  ;;  %s1431_s1 = smov 122   ;;  %s3082_s28 = sld [smem:[#allocation68_spill]] }
 0x139   : > { %v774_v60 = vmul.f32 %v3072_v9, %v2244_v13  ;;  %v560_v33 = vmul.f32 %v3073_v20, %v2010_v14  ;;  %v969_v58 = vadd.f32 %v967_v42, %v925_v38  ;;  %v814_v21 = vadd.f32 %v812_v3, %v770_v41  ;;  %s3083_s9 = sld [smem:[#allocation69_spill]] }
 0x13a   : > { %v688_v54 = vadd.f32 %v686_v49, %v644_v47  ;;  %v3074_v26 = vstv %s2961_s3  ;;  %v3075_v34 = vstv %s3066_s12  ;;  %v3076_v12 = vstv %s3068_s26  ;;  %s3080_s3 = sld [smem:[#allocation77_spill]] }
 0x13b   : > { %v604_v1 = vmul.f32 %v3074_v26, %v2012_v53  ;;  %v562_v61 = vadd.f32 %v560_v33, %v518_v52  ;;  %v390_v31 = vmul.f32 %v3075_v34, %v1948_v32  ;;  %v434_v46 = vmul.f32 %v3076_v12, %v1950_v11  ;;  %1023 = vrot.lane.b32.xlu0 %v969_v58, %s1431_s1  ;;  %s3086_s12 = sld [smem:[#allocation78_spill]] }
 0x13c   : > { %v3077_v15 = vstv %s3069_s16  ;;  %v858_v42 = vadd.f32 %v856_v27, %v814_v21  ;;  %v3081_v49 = vstv %s3007_s15  ;;  %v732_v48 = vadd.f32 %v730_v8, %v688_v54  ;;  %s3087_s11 = sld [smem:[#allocation88_spill]]  ;;  %s3101_s16 = smov 126  }
 0x13d   : > { %v478_v37 = vmul.f32 %v3077_v15, %v1984_v25  ;;  %v900_v38 = vmul.f32 %v3081_v49, %v2270_v18  ;;  %v622_v43 = vstv %s2324_s24  ;;  %v606_v3 = vadd.f32 %v604_v1, %v562_v61  ;;  %s3090_s15 = sld [smem:[#allocation65_spill]] }
 0x13e   : > { %v3084_v4 = vstv %s2964_s19  ;;  %v3085_v55 = vstv %s2972_s5  ;;  %v436_v56 = vadd.f32 %v434_v46, %v390_v31  ;;  %v3088_v27 = vstv %s3015_s10  ;;  %s3092_s26 = sld [smem:[#allocation89_spill]] }
 0x13f   : > { %v648_v10 = vmul.f32 %v3084_v4, %v2017_v51  ;;  %v692_v41 = vmul.f32 %v3085_v55, %v2218_v50  ;;  %v902_v47 = vadd.f32 %v900_v38, %v858_v42  ;;  %v944_v16 = vmul.f32 %v3088_v27, %v2291_v40  ;;  %s3093_s19 = sld [smem:[#allocation90_spill]] }
 0x140   : > { %v776_v9 = vadd.f32 %v774_v60, %v732_v48  ;;  %v3089_v8 = vstv %s3078_s20  ;;  %v3091_v20 = vstv %s3079_s23  ;;  %v480_v21 = vadd.f32 %v478_v37, %v436_v56  ;;  %s3095_s5 = sld [smem:[#allocation79_spill]] }
 0x141   : > { %v818_v52 = vmul.f32 %v3089_v8, %v2246_v19  ;;  %v862_v33 = vmul.f32 %v3091_v20, %v2262_v57  ;;  %v650_v58 = vadd.f32 %v648_v10, %v606_v3  ;;  %v3094_v54 = vstv %s3080_s3  ;;  %s3098_s10 = sld [smem:[#allocation70_spill]] }
 0x142   : > { %v522_v26 = vmul.f32 %v3094_v54, %v1994_v29  ;;  %v946_v1 = vadd.f32 %v944_v16, %v902_v47  ;;  %v3096_v60 = vstv %s3082_s28  ;;  %v3097_v31 = vstv %s3083_s9  ;;  %s3102_s20 = sld [smem:[#allocation80_spill]] }
 0x143   : > { %v820_v61 = vadd.f32 %v818_v52, %v776_v9  ;;  %v736_v34 = vmul.f32 %v3096_v60, %v2220_v30  ;;  %v780_v12 = vmul.f32 %v3097_v31, %v2244_v13  ;;  %v694_v46 = vadd.f32 %v692_v41, %v650_v58  ;;  %s3103_s23 = sld [smem:[#allocation81_spill]] }
 0x144   : > { %v524_v15 = vadd.f32 %v522_v26, %v480_v21  ;;  %v3099_v42 = vstv %s3086_s12  ;;  %v3100_v49 = vstv %s3087_s11  ;;  %985 = vrot.lane.b32.xlu1 %v946_v1, %s3101_s16  ;;  %v3104_v3 = vstv %s3090_s15  ;;  %s3107_s3 = sld [smem:[#allocation91_spill]] }
 0x145   : > { %v566_v37 = vmul.f32 %v3099_v42, %v2010_v14  ;;  %v396_v38 = vmul.f32 %v3100_v49, %v1948_v32  ;;  %v864_v48 = vadd.f32 %v862_v33, %v820_v61  ;;  %v906_v4 = vmul.f32 %v3104_v3, %v2270_v18  ;;  %s3109_s28 = sld [smem:[#allocation92_spill]] }
 0x146   : > { %v3105_v10 = vstv %s3092_s26  ;;  %v3106_v41 = vstv %s3093_s19  ;;  %v738_v47 = vadd.f32 %v736_v34, %v694_v46  ;;  %v3108_v16 = vstv %s3095_s5  ;;  %s3112_s9 = sld [smem:[#allocation32_spill]] }
 0x147   : > { %v440_v55 = vmul.f32 %v3105_v10, %v1950_v11  ;;  %v484_v56 = vmul.f32 %v3106_v41, %v1984_v25  ;;  %v568_v27 = vadd.f32 %v566_v37, %v524_v15  ;;  %v610_v9 = vmul.f32 %v3108_v16, %v2012_v53  ;;  %s3113_s12 = sld [smem:[#allocation22_spill]] }
 0x148   : > { %v666_v8 = vstv %s2368_s25  ;;  %v908_v52 = vadd.f32 %v906_v4, %v864_v48  ;;  %v3110_v20 = vstv %s3020_s18  ;;  %v3111_v58 = vstv %s3098_s10  ;;  %s3114_s11 = sld [smem:[#allocation24_spill]] }
 0x149   : > { %v950_v33 = vmul.f32 %v3110_v20, %v2291_v40  ;;  %v824_v21 = vmul.f32 %v3111_v58, %v2246_v19  ;;  %v442_v54 = vadd.f32 %v440_v55, %v396_v38  ;;  %v782_v26 = vadd.f32 %v780_v12, %v738_v47  ;;  %s3117_s15 = sld [smem:[#allocation82_spill]] }
 0x14a   : > { %v612_v1 = vadd.f32 %v610_v9, %v568_v27  ;;  %v3115_v61 = vstv %s3102_s20  ;;  %v3116_v34 = vstv %s3103_s23  ;;  %v3118_v15 = vstv %s3016_s7  ;;  %s3119_s18 = sld [smem:[#allocation83_spill]] }
 0x14b   : > { %v654_v60 = vmul.f32 %v3115_v61, %v2017_v51  ;;  %v698_v31 = vmul.f32 %v3116_v34, %v2218_v50  ;;  %v952_v46 = vadd.f32 %v950_v33, %v908_v52  ;;  %v868_v42 = vmul.f32 %v3118_v15, %v2262_v57  ;;  %s3122_s26 = sld [smem:[#allocation93_spill]] }
 0x14c   : > { %v486_v37 = vadd.f32 %v484_v56, %v442_v54  ;;  %v3120_v49 = vstv %s3107_s3  ;;  %v826_v12 = vadd.f32 %v824_v21, %v782_v26  ;;  %v3121_v48 = vstv %s3031_s8  ;;  %s3125_s7 = sld [smem:[#allocation94_spill]] }
 0x14d   : > { %v528_v38 = vmul.f32 %v3120_v49, %v1994_v29  ;;  %v912_v3 = vmul.f32 %v3121_v48, %v2270_v18  ;;  %v656_v4 = vadd.f32 %v654_v60, %v612_v1  ;;  %v3123_v10 = vstv %s3109_s28  ;;  %995 = vrot.lane.b32.xlu1 %v952_v46, %s1428_s0  ;;  %s3127_s19 = sld [smem:[#allocation95_spill]] }
 0x14e   : > { %v572_v55 = vmul.f32 %v3123_v10, %v2010_v14  ;;  %v3124_v47 = vstv %s3112_s9  ;;  %v3126_v27 = vstv %s3113_s12  ;;  %v3128_v9 = vstv %s3114_s11  ;;  %s3129_s8 = sld [smem:[#allocation23_spill]] }
 0x14f   : > { %v530_v41 = vadd.f32 %v528_v38, %v486_v37  ;;  %v359_v56 = vmul.f32 %v3124_v47, %v1808_v44  ;;  %v403_v16 = vmul.f32 %v3126_v27, %v1810_v28  ;;  %v447_v52 = vmul.f32 %v3128_v9, %v1854_v36  ;;  %s2459_s0 = sld [smem:[#allocation3 + $0x38]] }
 0x150   : > { %v870_v20 = vadd.f32 %v868_v42, %v826_v12  ;;  %v700_v33 = vadd.f32 %v698_v31, %v656_v4  ;;  %v3130_v58 = vstv %s3117_s15  ;;  %v3131_v54 = vstv %s3119_s18  ;;  %s3133_s5 = sld [smem:[#allocation84_spill]] }
 0x151   : > { %v742_v21 = vmul.f32 %v3130_v58, %v2220_v30  ;;  %v786_v26 = vmul.f32 %v3131_v54, %v2244_v13  ;;  %v3132_v44 = vstv %s3033_s13  ;;  %v574_v28 = vadd.f32 %v572_v55, %v530_v41  ;;  %s3135_s10 = sld [smem:[#allocation96_spill]] }
 0x152   : > { %v956_v1 = vmul.f32 %v3132_v44, %v2291_v40  ;;  %v3134_v36 = vstv %s3122_s26  ;;  %v405_v60 = vadd.f32 %v403_v16, %v359_v56  ;;  %s2467_s16 = sld [smem:[#allocation3 + $0x3f]]  ;;  %v914_v34 = vadd.f32 %v912_v3, %v870_v20 }
 0x153   : > { %v616_v61 = vmul.f32 %v3134_v36, %v2012_v53  ;;  %v744_v31 = vadd.f32 %v742_v21, %v700_v33  ;;  %v3136_v46 = vstv %s3125_s7  ;;  %v3137_v42 = vstv %s3127_s19  ;;  %s2490_s20 = sld [smem:[#allocation3 + $0x46]] }
 0x154   : > { %v660_v15 = vmul.f32 %v3136_v46, %v2017_v51  ;;  %v704_v37 = vmul.f32 %v3137_v42, %v2218_v50  ;;  %v449_v38 = vadd.f32 %v447_v52, %v405_v60  ;;  %v3139_v12 = vstv %s3129_s8  ;;  %s2521_s23 = sld [smem:[#allocation3 + $0x54]] }
 0x155   : > { %v618_v49 = vadd.f32 %v616_v61, %v574_v28  ;;  %v491_v48 = vmul.f32 %v3139_v12, %v1856_v17  ;;  %v535_v4 = vmul.f32 %v534_v24, %v1894_v45  ;;  %v958_v3 = vadd.f32 %v956_v1, %v914_v34  ;;  %s2526_s3 = sld [smem:[#allocation3 + $0x5b]] }
 0x156   : > { %v788_v10 = vadd.f32 %v786_v26, %v744_v31  ;;  %v3140_v55 = vstv %s3133_s5  ;;  %v3141_v47 = vstv %s3025_s6  ;;  %v3143_v45 = vstv %s3112_s9  ;;  %s2499_s6 = sld [smem:[#allocation3 + $0x4d]] }
 0x157   : > { %v830_v41 = vmul.f32 %v3140_v55, %v2246_v19  ;;  %v874_v56 = vmul.f32 %v3141_v47, %v2262_v57  ;;  %v662_v27 = vadd.f32 %v660_v15, %v618_v49  ;;  %v3142_v16 = vstv %s3135_s10  ;;  %1005 = vrot.lane.b32.xlu1 %v958_v3, %s1429_s2 }
 0x158   : > { %v748_v9 = vmul.f32 %v3142_v16, %v2220_v30  ;;  %v493_v17 = vadd.f32 %v491_v48, %v449_v38  ;;  %v360_v52 = vmul.f32 %v3143_v45, %v1948_v32  ;;  %v792_v33 = vmul.f32 %v790_v23, %v2244_v13 }
 0x159   : > { %v832_v20 = vadd.f32 %v830_v41, %v788_v10  ;;  %v3144_v58 = vstv %s3113_s12  ;;  %v3145_v54 = vstv %s3114_s11  ;;  %v706_v44 = vadd.f32 %v704_v37, %v662_v27  ;;  %s1432_s11 = smov [#allocation6]  }
 0x15a   : > { %v404_v21 = vmul.f32 %v3144_v58, %v1950_v11  ;;  %v448_v26 = vmul.f32 %v3145_v54, %v1984_v25  ;;  %v537_v1 = vadd.f32 %v535_v4, %v493_v17  ;;  %v579_v32 = vmul.f32 %v578_v39, %v1916_v7  ;;  %s1354_s15 = sshll.u32 %s1432_s11, 4  ;;  %s1355_s15 = int_to_ptr.vmem [resolvable:$false] %s1354_s15 }
 0x15b   : > { %v623_v28 = vmul.f32 %v622_v43, %v1931_v6  ;;  %v876_v23 = vadd.f32 %v874_v56, %v832_v20  ;;  %v3146_v36 = vstv %s3038_s21  ;;  %v710_v60 = vstv %s2459_s0  ;;  %s1356_s18 = scalar_lea.vmem %s1355_s15, 512 }
 0x15c   : > { %v918_v61 = vmul.f32 %v3146_v36, %v2270_v18  ;;  %v406_v11 = vadd.f32 %v404_v21, %v360_v52  ;;  %v750_v34 = vadd.f32 %v748_v9, %v706_v44  ;;  %v581_v25 = vadd.f32 %v579_v32, %v537_v1 }
 0x15d   : > { %v667_v31 = vmul.f32 %v666_v8, %v2068_v59  ;;  %v754_v46 = vstv %s2467_s16  ;;  %v3148_v6 = vstv %s3046_s17  ;;  %v3149_v37 = vmov %v3139_v12 }
 0x15e   : > { %v920_v7 = vadd.f32 %v918_v61, %v876_v23  ;;  %v962_v15 = vmul.f32 %v3148_v6, %v2291_v40  ;;  %v450_v42 = vadd.f32 %v448_v26, %v406_v11  ;;  %v492_v49 = vmul.f32 %v3149_v37, %v1994_v29 }
 0x15f   : > { %v794_v38 = vadd.f32 %v792_v33, %v750_v34  ;;  %v3150_v12 = vstv %s3037_s30  ;;  %v625_v48 = vadd.f32 %v623_v28, %v581_v25  ;;  %v880_v3 = vmul.f32 %v878_v22, %v2262_v57  ;;  %s3154_s30 = sld [smem:[#allocation13_spill]] }
 0x160   : > { %v836_v59 = vmul.f32 %v3150_v12, %v2246_v19  ;;  %v964_v4 = vadd.f32 %v962_v15, %v920_v7  ;;  %v494_v10 = vadd.f32 %v492_v49, %v450_v42  ;;  %v536_v55 = vmul.f32 %v534_v24, %v2010_v14 }
 0x161   : > { %v669_v29 = vadd.f32 %v667_v31, %v625_v48  ;;  %v711_v47 = vmul.f32 %v710_v60, %v2070_v5  ;;  %v755_v56 = vmul.f32 %v754_v46, %v2118_v62  ;;  %v798_v27 = vstv %s2490_s20 }
 0x162   : > { %v838_v41 = vadd.f32 %v836_v59, %v794_v38  ;;  %1015 = vrot.lane.b32.xlu1 %v964_v4, %s1430_s4  ;;  %v842_v16 = vstv %s2499_s6  ;;  %v538_v9 = vadd.f32 %v536_v55, %v494_v10  ;;  %v580_v22 = vmul.f32 %v578_v39, %v2012_v53 }
 0x163   : > { %v3151_v14 = vstv %s3049_s22  ;;  %v713_v45 = vadd.f32 %v711_v47, %v669_v29  ;;  %v3152_v52 = vstv %s1852_s29  ;;  %v624_v62 = vmul.f32 %v622_v43, %v2017_v51  ;;  %s3153_s29 = sld [smem:[#allocation10_spill]] }
 0x164   : > { %v882_v17 = vadd.f32 %v880_v3, %v838_v41  ;;  %v924_v24 = vmul.f32 %v3151_v14, %v2270_v18  ;;  %v968_v5 = vmul.f32 %v3152_v52, %v2291_v40  ;;  %v582_v20 = vadd.f32 %v580_v22, %v538_v9 }
 0x165   : > { %v668_v33 = vmul.f32 %v666_v8, %v2218_v50  ;;  %v757_v21 = vadd.f32 %v755_v56, %v713_v45  ;;  %v799_v54 = vmul.f32 %v798_v27, %v2120_v63  ;;  %v843_v53 = vmul.f32 %v842_v16, %v2151_v2  ;;  %s1259_s27 = sshll.u32 %s3154_s30, 8 }
 0x166   : > { %v926_v58 = vadd.f32 %v924_v24, %v882_v17  ;;  %v886_v39 = vstv %s2521_s23  ;;  %v930_v26 = vstv %s2526_s3  ;;  %v626_v44 = vadd.f32 %v624_v62, %v582_v20 }
 0x167   : > { %v801_v32 = vadd.f32 %v799_v54, %v757_v21  ;;  %v712_v23 = vmul.f32 %v710_v60, %v2220_v30  ;;  %v756_v36 = vmul.f32 %v754_v46, %v2244_v13  ;;  %v887_v50 = vmul.f32 %v886_v39, %v2153_v35 }
 0x168   : > { %v970_v1 = vadd.f32 %v968_v5, %v926_v58  ;;  %v670_v28 = vadd.f32 %v668_v33, %v626_v44  ;;  %v931_v43 = vmul.f32 %v930_v26, %v2180_v0  ;;  %v800_v2 = vmul.f32 %v798_v27, %v2246_v19 }
 0x169   : > { %v845_v51 = vadd.f32 %v843_v53, %v801_v32  ;;  %v844_v34 = vmul.f32 %v842_v16, %v2262_v57  ;;  %v888_v30 = vmul.f32 %v886_v39, %v2270_v18  ;;  %v932_v13 = vmul.f32 %v930_v26, %v2291_v40  ;;  %s148_s21 = sand.u32 1, %s3153_s29  }
 0x16a   : > { %1025 = vrot.lane.b32.xlu1 %v970_v1, %s1431_s1  ;;  %v714_v63 = vadd.f32 %v712_v23, %v670_v28  ;;  %s1140_s22 = sshll.u32 %s148_s21, 4  ;;  %s3156_s1 = sld [smem:[#allocation99_spill]] }
 0x16b   : > { %v889_v8 = vadd.f32 %v887_v50, %v845_v51  ;;  %s150_s17 = scalar_lea.vmem [#allocation6], %s1140_s22  ;;  %s2584_s9 = scalar_lea.sflag [#allocation4], %s148_s21 }
 0x16c   : > { %v758_v61 = vadd.f32 %v756_v36, %v714_v63  ;;  %s1060_s24 = sshll.u32 %s150_s17, 4  ;;  %s2581_s24 = int_to_ptr.vmem [resolvable:$true] %s1060_s24 }
 0x16d   : > { %v933_v11 = vadd.f32 %v931_v43, %v889_v8  ;;  %s1350_s12 = scalar_lea.vmem %s2581_s24, 256  ;;  %p1357_p13 = scmp.lt.s32.totalorder %s2581_s24, %s1355_s15 }
 0x16e   : > { %v802_v25 = vadd.f32 %v800_v2, %v758_v61  ;;  %p1351_p9 = scmp.ne.s32.totalorder %s2581_s24, %s1350_s12  ;;  %p1358_p0 = scmp.lt.s32.totalorder %s1356_s18, %s1350_s12 }
 0x170   : > { %v846_v60 = vadd.f32 %v844_v34, %v802_v25  ;;  %s2579_s28 = scalar_lea.hbm %s3156_s1, %s1259_s27  ;;  %p1352_p10 = pnand %p1351_p9, %p1488_p5 }
 0x171   : > { %p1359_p1 = por %p1358_p0, %p1357_p13 }
 0x172   : > { %v890_v31 = vadd.f32 %v888_v30, %v846_v60  ;;  %p1353_p12 = pneg %p1352_p10 }
 0x174   : > { %v934_v46 = vadd.f32 %v932_v13, %v890_v31  ;;  %p1360_p2 = pnand %p1359_p1, %p1353_p12 }
 0x192   : > { %v974_v7 = vpop.permute.xlu0 %973 }
 0x193   : > { %v979_v0 = vadd.f32 %v974_v7, %v933_v11 }
 0x196   : > { %v984_v35 = vpop.permute.xlu0 %983 }
 0x197   : > { %v989_v42 = vadd.f32 %v984_v35, %v979_v0 }
 0x19a   : > { %v994_v6 = vpop.permute.xlu0 %993 }
 0x19b   : > { %v999_v37 = vadd.f32 %v994_v6, %v989_v42 }
 0x1a0   : > { %v1004_v15 = vpop.permute.xlu0 %1003 }
 0x1a1   : > { %v1009_v49 = vadd.f32 %v1004_v15, %v999_v37 }
 0x1a6   : > { %v1014_v19 = vpop.permute.xlu0 %1013 }
 0x1a7   : > { %v1019_v38 = vadd.f32 %v1014_v19, %v1009_v49  ;;  %v976_v18 = vpop.permute.xlu1 %975 }
 0x1a8   : > { %v980_v55 = vadd.f32 %v976_v18, %v934_v46 }
 0x1ad   : > { %v1024_v57 = vpop.permute.xlu0 %1023 }
 0x1ae   : > { %v1029_v12 = vadd.f32 %v1024_v57, %v1019_v38 }
 0x1b0   : > { %v1251_v59 = vmul.f32 -1.442695, %v1029_v12 }
 0x1b2   : > { %1327 = vpow2.f32 %v1251_v59 }
 0x1b6   : > { %v986_v48 = vpop.permute.xlu1 %985 }
 0x1b7   : > { %v990_v41 = vadd.f32 %v986_v48, %v980_v55 }
 0x1bf   : > { %v996_v40 = vpop.permute.xlu1 %995  ;;  %v1328_v4 = vpop.eup %1327 }
 0x1c0   : > { %v1037_v3 = vadd.f32 1.0, %v1328_v4  ;;  %v1000_v47 = vadd.f32 %v996_v40, %v990_v41 }
 0x1c2   : > { %1329 = vrcp.f32 %v1037_v3 }
 0x1c9   : > { %v1006_v10 = vpop.permute.xlu1 %1005 }
 0x1ca   : > { %v1010_v56 = vadd.f32 %v1006_v10, %v1000_v47 }
 0x1cf   : > { %v1330_v16 = vpop.eup %1329 }
 0x1d0   : > { %1044 = vst.msk [vmem:[%s150_s17] sm:$0xff] %vm1043_vm1, %v1330_v16 }
 0x1d4   : > { %v1016_v29 = vpop.permute.xlu1 %1015 }
 0x1d5   : > { %v1020_v27 = vadd.f32 %v1016_v29, %v1010_v56 }
 0x1dc   : > { %v1026_v9 = vpop.permute.xlu1 %1025 }
 0x1dd   : > { %v1030_v22 = vadd.f32 %v1026_v9, %v1020_v27 }
 0x1df   : > { %v1252_v17 = vmul.f32 -1.442695, %v1030_v22 }
 0x1e1   : > { %1331 = vpow2.f32 %v1252_v17 }
 0x1ee   : > { %v1332_v14 = vpop.eup %1331 }
 0x1ef   : > { %v1038_v24 = vadd.f32 1.0, %v1332_v14 }
 0x1f1   : > { %1333 = vrcp.f32 %v1038_v24 }
 0x1fe   : > { %v1334_v45 = vpop.eup %1333 }
 0x1ff   : > { %1045 = vst.msk [vmem:[%s150_s17 + $0x8] sm:$0xff] %vm1043_vm1, %v1334_v45 }
 0x200   : > { %1363 = shalt.err (!%p1360_p2)
}
 0x201   : > { %s1364_s26 = scalar_lea.hbm %s2579_s28, 256  ;;  %s1368_s8 = scalar_lea.hbm %s3156_s1, 512 }
 0x202   : > { %p1365_p3 = scmp.ne.s32.totalorder %s2579_s28, %s1364_s26  ;;  %p1369_p8 = scmp.lt.s32.totalorder %s2579_s28, %s3156_s1 }
 0x203   : > { %p1370_p11 = scmp.lt.s32.totalorder %s1368_s8, %s1364_s26 }
 0x204   : > { %p1366_p4 = pnand %p1365_p3, %p1488_p5 }
 0x205   : > { %p1371_p9 = por %p1370_p11, %p1369_p8 }
 0x206   : > { %p1367_p7 = pneg %p1366_p4 }
 0x208   : > { %p1372_p10 = pnand %p1371_p9, %p1367_p7 }
 0x20a   : > { %1375 = shalt.err (!%p1372_p10)
}
 0x20b   : > { %s1433_s10 = smov 128   ;;  %s1434_s16 = smov 8  }
 0x20c   : > { %1264 = dma.vmem_to_hbm [thread:$0]  (%p1488_p5), %s2581_s24, 256, %s2579_s28, %s2584_s9, %s1433_s10, %s1433_s10, %s1434_s16  }
 0x20d PF: > { %s3157_s13 = sld [smem:[#allocation12_spill]] }
 0x20e   : > { %s3158_s20 = sld [smem:[#allocation9_spill]] }
 0x213   : > { %p1276_p12 = scmp.ge.s32.totalorder %s3157_s13, 2 }
 0x214   : > { %s1075_s2 = sand.u32 1, %s3158_s20  }
 0x215   : > { %p1271_p13 = pnand %p1276_p12, %p1492_p6  ;;  %s1076_s23 = scalar_lea.sflag [#allocation4], %s1075_s2 }
 0x217   : > { %p1272_p0 = pneg %p1271_p13 }
 0x219   : > { %1397 = dma.done.wait (%p1272_p0), %s1076_s23, 256  }
 0x21a   : > { %1399 = vsyncadd (%p1272_p0), %s1076_s23, 4294967040  ;;  %s3160_s12 = sld [smem:[#allocation14_spill]] }
 0x21b   : > { %s3161_s9 = sld [smem:[#allocation10_spill]] }
 0x21c   : > { %s3162_s10 = sld [smem:[#allocation11_spill]] }
 0x21d   : > { %s3163_s11 = sld [smem:[#allocation15_spill]] }
 0x220   : > { %p13_p1 = scmp.ge.s32.totalorder %s3160_s12, 4  }
 0x222   :  { %15 = sbr.rel (!%p13_p1) target bundleno = 8 (0x8), region = 79 }
 0x227   :  { %1081 = vsyncpa [#allocation4], 1 }
 0x228   :  { %1083 = vsyncpa [#allocation4 + $0x1], 1 }
 0x229   :  { %1084 = vsyncpa [#allocation5], 1 }
 0x22a   :  { %1086 = vsyncpa [#allocation5 + $0x1], 1 }

</bundles_post_ra>
